<compile_context>
chip_gen: v6e
topology: v6e:2x2x1
jax: 0.10.0
libtpu: 0.0.40
codegen_flags: <defaults>
</compile_context>

<pallas_src>
import jax
import jax.numpy as jnp
from jax.experimental import pallas as pl
from jax.experimental.pallas import tpu as pltpu


def _round_up(a, b):
    return (a + b - 1) // b * b


def _tpu_hw_info():
    """Best-effort (tensorcores per chip, physical VMEM bytes per core)."""
    kind = getattr(jax.devices()[0], "device_kind", "").lower()
    is_v7 = "v7" in kind
    n_tc = 2 if is_v7 else 1
    vmem_bytes = (64 << 20) if is_v7 else (128 << 20)
    try:  # narrow, optional refinement via the trace-time query
        vmem_bytes = int(pltpu.get_tpu_info().vmem_capacity_bytes)
    except Exception:  # pragma: no cover - older jax / emulated backend
        pass
    return n_tc, vmem_bytes


# --------------------------------------------------------------------------------------
# Fused path: both FxF weights resident in VMEM, one grid axis over row tiles.
# --------------------------------------------------------------------------------------
def residual_fused_kernel(x_ref, w1_ref, w2_ref, vec_ref, o_ref):
    """out = x + PreAct2(PreAct1(x)) for one row tile; alpha pre-folded into W rows.

    vec_ref rows: 0=b1, 1=beta1, 2=b2, 3=beta2 (rows 4..7 are zero padding).
    """
    x = x_ref[...].astype(jnp.float32)
    b1, be1 = vec_ref[0:1, :], vec_ref[1:2, :]
    b2, be2 = vec_ref[2:3, :], vec_ref[3:4, :]
    mxu = w1_ref.dtype

    # TODO(synk): dropout is identity at rate=0 / eval mode; no RNG path implemented.
    h1 = x * jax.nn.sigmoid(be1 * x)                        # alpha1 folded into w1 rows
    y1 = jnp.dot(h1.astype(mxu), w1_ref[...],
                 preferred_element_type=jnp.float32) + b1
    h2 = y1 * jax.nn.sigmoid(be2 * y1)                      # alpha2 folded into w2 rows
    y2 = jnp.dot(h2.astype(mxu), w2_ref[...],
                 preferred_element_type=jnp.float32) + b2
    o_ref[...] = (x + y2).astype(o_ref.dtype)


# --------------------------------------------------------------------------------------
# Large-F fallback: one pallas_call per PreActivation layer, K-tiled (weights streamed).
# --------------------------------------------------------------------------------------
def _preact_tiled_body(h_ref, w_ref, beta_ref, b_ref, o_ref, acc_ref, res_ref):
    k = pl.program_id(1)

    @pl.when(k == 0)
    def _():
        acc_ref[...] = jnp.zeros_like(acc_ref)

    h = h_ref[...].astype(jnp.float32)
    s = h * jax.nn.sigmoid(beta_ref[...] * h)               # alpha folded into w rows
    acc_ref[...] += jnp.dot(s.astype(w_ref.dtype), w_ref[...],
                            preferred_element_type=jnp.float32)

    @pl.when(k == pl.num_programs(1) - 1)
    def _():
        y = acc_ref[...] + b_ref[...]
        if res_ref is not None:
            y = y + res_ref[...].astype(jnp.float32)
        o_ref[...] = y.astype(o_ref.dtype)


def _make_preact_tiled_kernel(add_residual):
    if add_residual:
        def kernel(h_ref, w_ref, beta_ref, b_ref, res_ref, o_ref, acc_ref):
            _preact_tiled_body(h_ref, w_ref, beta_ref, b_ref, o_ref, acc_ref, res_ref)
    else:
        def kernel(h_ref, w_ref, beta_ref, b_ref, o_ref, acc_ref):
            _preact_tiled_body(h_ref, w_ref, beta_ref, b_ref, o_ref, acc_ref, None)
    return kernel


def _preact_tiled(h, w, beta, b, res, out_dtype, tm, tk, vmem_limit):
    """One PreActivation layer: swish(h) @ w + b (+ res), weights streamed in K slabs."""
    N, F = h.shape
    w_item = jnp.dtype(w.dtype).itemsize
    o_item = jnp.dtype(out_dtype).itemsize
    grid = (pl.cdiv(N, tm), F // tk)

    in_specs = [
        pl.BlockSpec((tm, tk), lambda i, k: (i, k)),        # activation K-slab
        pl.BlockSpec((tk, F), lambda i, k: (k, 0)),         # weight K-slab (streamed)
        pl.BlockSpec((1, tk), lambda i, k: (0, k)),         # beta K-slab
        pl.BlockSpec((1, F), lambda i, k: (0, 0)),          # bias (full)
    ]
    args = [h, w, beta, b]
    if res is not None:
        in_specs.append(pl.BlockSpec((tm, F), lambda i, k: (i, 0)))
        args.append(res)

    cost = pl.CostEstimate(
        flops=2 * N * F * F,
        transcendentals=N * F,
        bytes_accessed=N * F * (jnp.dtype(h.dtype).itemsize + o_item)
        + F * F * w_item
        + (N * F * jnp.dtype(res.dtype).itemsize if res is not None else 0),
    )
    return pl.pallas_call(
        _make_preact_tiled_kernel(res is not None),
        out_shape=jax.ShapeDtypeStruct((N, F), out_dtype),
        grid_spec=pltpu.PrefetchScalarGridSpec(
            num_scalar_prefetch=0,
            grid=grid,
            in_specs=in_specs,
            out_specs=pl.BlockSpec((tm, F), lambda i, k: (i, 0)),
            scratch_shapes=[pltpu.VMEM((tm, F), jnp.float32)],
        ),
        compiler_params=pltpu.CompilerParams(
            dimension_semantics=("parallel", "arbitrary"),
            vmem_limit_bytes=vmem_limit,
        ),
        cost_estimate=cost,
    )(*args)


# --------------------------------------------------------------------------------------
# Wrapper
# --------------------------------------------------------------------------------------
def prepare_params(params, mxu_dtype=jnp.bfloat16):
    """One-time constant prep: fold alpha into W rows (in f32), then cast to MXU dtype.

    params: torch weights already transposed to [F_in, F_out]; call this once and reuse.
    """
    f = params["w1"].shape[0]
    w1 = (params["alpha1"].reshape(-1, 1).astype(jnp.float32)
          * params["w1"].astype(jnp.float32)).astype(mxu_dtype)
    w2 = (params["alpha2"].reshape(-1, 1).astype(jnp.float32)
          * params["w2"].astype(jnp.float32)).astype(mxu_dtype)
    vec = jnp.concatenate(
        [params["b1"], params["beta1"], params["b2"], params["beta2"],
         jnp.zeros((4, f), jnp.float32)], axis=0).astype(jnp.float32)     # (8, F)
    return {
        "w1": w1, "w2": w2, "vec": vec,
        "b1": params["b1"].astype(jnp.float32),
        "b2": params["b2"].astype(jnp.float32),
        "beta1": params["beta1"].astype(jnp.float32),
        "beta2": params["beta2"].astype(jnp.float32),
    }


def residual_forward(x, prepped, *, tm=None, tk=None, out_dtype=None, force_tiled=False):
    """x: [N, F] (f32 or bf16).  prepped: output of prepare_params()."""
    N, F = x.shape
    out_dtype = jnp.dtype(x.dtype if out_dtype is None else out_dtype)
    w1, w2, vec = prepped["w1"], prepped["w2"], prepped["vec"]
    w_item = jnp.dtype(w1.dtype).itemsize
    x_item = jnp.dtype(x.dtype).itemsize
    o_item = out_dtype.itemsize

    n_tc, vmem_phys = _tpu_hw_info()
    # Leave internal-scratch headroom on 64 MiB chips (v7x); open up on 128 MiB chips.
    vmem_ceiling = (52 << 20) if vmem_phys <= (64 << 20) else (96 << 20)

    # Constants are single-buffered when pipeline_mode=pl.Buffered is available
    # (explicit feature check instead of a broad try/except).
    single_buffer_consts = hasattr(pl, "Buffered")
    const_factor = 1 if single_buffer_consts else 2
    const_bytes = const_factor * (2 * F * F * w_item + 8 * F * 4)

    # Per-row VMEM of the fused path: x + out double-buffered, ~6 f32 intermediates.
    per_row = F * (2 * x_item + 2 * o_item + 6 * 4)
    max_tm = (vmem_ceiling - const_bytes - (2 << 20)) // per_row
    max_tm = max(0, max_tm) // 8 * 8
    fused_fits = max_tm >= min(128, _round_up(N, 8))

    if fused_fits and not force_tiled:
        tm_sel = 2048 if tm is None else int(tm)
        tm_sel = min(_round_up(tm_sel, 8), _round_up(N, 8), max_tm)
        if n_tc > 1 and N >= 256:
            # Multi-TensorCore chips only (v7x): >=2 grid steps so both cores get rows.
            tm_sel = min(tm_sel, _round_up(pl.cdiv(N, n_tc), 128))
        tm_sel = max(8, tm_sel)

        vmem_limit = const_bytes + tm_sel * per_row + (4 << 20)
        vmem_limit = max(32 << 20, min(vmem_limit, vmem_ceiling))

        cost = pl.CostEstimate(
            flops=4 * N * F * F,                            # two N x F x F matmuls
            transcendentals=2 * N * F,                      # two sigmoids per element
            bytes_accessed=N * F * (x_item + o_item) + 2 * F * F * w_item + 8 * F * 4,
        )

        const_kw = dict(pipeline_mode=pl.Buffered(1)) if single_buffer_consts else {}
        row_in = pl.BlockSpec((tm_sel, F), lambda i: (i, 0))
        row_out = pl.BlockSpec((tm_sel, F), lambda i: (i, 0))
        mat_spec = pl.BlockSpec((F, F), lambda i: (0, 0), **const_kw)
        vec_spec = pl.BlockSpec((8, F), lambda i: (0, 0), **const_kw)

        return pl.pallas_call(
            residual_fused_kernel,
            out_shape=jax.ShapeDtypeStruct((N, F), out_dtype),
            grid_spec=pltpu.PrefetchScalarGridSpec(
                num_scalar_prefetch=0,
                grid=(pl.cdiv(N, tm_sel),),                 # ragged tail handled by Pallas
                in_specs=[row_in, mat_spec, mat_spec, vec_spec],
                out_specs=row_out,
            ),
            compiler_params=pltpu.CompilerParams(
                dimension_semantics=("parallel",),
                vmem_limit_bytes=vmem_limit,
            ),
            cost_estimate=cost,
        )(x, w1, w2, vec)

    # ----------------- large-F fallback: K-tiled, weights streamed -----------------
    if F % 128 != 0:
        raise ValueError(
            f"feat_dim={F}: resident FxF weights do not fit in VMEM and the K-tiled "
            f"fallback requires feat_dim % 128 == 0.")
    if tk is None:
        tk = next(c for c in (512, 384, 256, 128) if F % c == 0)
    tk = int(tk)
    assert F % tk == 0 and tk % 128 == 0, "tk must be a multiple of 128 dividing feat_dim"

    w_step = 2 * tk * F * w_item + 2 * F * 4 + 2 * tk * 4   # streamed W + bias/beta slabs
    per_row_t = F * 4 + 2 * F * o_item + 2 * tk * x_item + 2 * F * 4 + 2 * F * 4
    max_tm_t = (vmem_ceiling - w_step - (2 << 20)) // per_row_t
    max_tm_t = max(8, max(0, max_tm_t) // 8 * 8)
    tm_t = 512 if tm is None else int(tm)
    tm_t = min(_round_up(tm_t, 8), _round_up(N, 8), max_tm_t)
    if n_tc > 1 and N >= 256:
        tm_t = min(tm_t, _round_up(pl.cdiv(N, n_tc), 128))
    tm_t = max(8, tm_t)
    vmem_limit_t = max(32 << 20, min(w_step + tm_t * per_row_t + (4 << 20), vmem_ceiling))

    y1 = _preact_tiled(x, w1, prepped["beta1"], prepped["b1"], None,
                       jnp.float32, tm_t, tk, vmem_limit_t)
    return _preact_tiled(y1, w2, prepped["beta2"], prepped["b2"], x,
                         out_dtype, tm_t, tk, vmem_limit_t)


# --------------------------------------------------------------------------------------
# Reference & test
# --------------------------------------------------------------------------------------
def residual_reference(x, params, mxu_dtype=jnp.float32):
    """Pure-JAX reference of the torch forward (optionally emulating bf16 MXU inputs)."""
    def preact(h, w, b, a, be):
        s = a * h * jax.nn.sigmoid(be * h)                  # learnable swish, dropout=0
        return jnp.dot(s.astype(mxu_dtype), w.astype(mxu_dtype),
                       preferred_element_type=jnp.float32) + b
    y = preact(x, params["w1"], params["b1"], params["alpha1"], params["beta1"])
    y = preact(y, params["w2"], params["b2"], params["alpha2"], params["beta2"])
    return x + y


def make_params(key, feat_dim):
    ks = jax.random.split(key, 6)
    scale = 1.0 / jnp.sqrt(feat_dim)
    # NOTE: the torch module zero-inits the *last* layer weight (zeros_initializer);
    # small random values are used so the second matmul path is actually exercised.
    # alpha is perturbed away from its 1.0 init so the alpha -> weight folding is tested.
    return {
        "w1": jax.random.normal(ks[0], (feat_dim, feat_dim), jnp.float32) * scale,
        "b1": jax.random.normal(ks[1], (1, feat_dim), jnp.float32) * 0.1,
        "alpha1": 1.0 + 0.1 * jax.random.normal(ks[4], (1, feat_dim), jnp.float32),
        "beta1": jnp.full((1, feat_dim), 1.702, jnp.float32),
        "w2": jax.random.normal(ks[2], (feat_dim, feat_dim), jnp.float32) * scale,
        "b2": jax.random.normal(ks[3], (1, feat_dim), jnp.float32) * 0.1,
        "alpha2": 1.0 + 0.1 * jax.random.normal(ks[5], (1, feat_dim), jnp.float32),
        "beta2": jnp.full((1, feat_dim), 1.702, jnp.float32),
    }


if __name__ == "__main__":
    key = jax.random.PRNGKey(0)
    kx, kp = jax.random.split(key)

    # Small shapes consistent with the module: N atoms x feat_dim features.
    N, F = 500, 128                       # N deliberately not a multiple of the tile
    x = jax.random.normal(kx, (N, F), jnp.float32)
    params = make_params(kp, F)
    prepped = prepare_params(params)      # one-time: fold alpha, cast weights to bf16

    # 1) default fast path: bf16 MXU inputs, f32 swish/accumulation/residual, f32 out.
    out = jax.block_until_ready(residual_forward(x, prepped))
    assert out.shape == (N, F) and out.dtype == jnp.float32
    ref_bf16 = residual_reference(x, params, mxu_dtype=jnp.bfloat16)
    ref_f32 = residual_reference(x, params, mxu_dtype=jnp.float32)
    assert jnp.allclose(out, ref_bf16, rtol=5e-2, atol=5e-2), \
        f"bf16 path: max abs diff {jnp.max(jnp.abs(out - ref_bf16))}"
    assert jnp.allclose(out, ref_f32, rtol=8e-2, atol=8e-2), \
        f"vs pure-f32 ref: max abs diff {jnp.max(jnp.abs(out - ref_f32))}"

    # 2) bf16 output variant (halves the output HBM stream).
    out_bf16 = jax.block_until_ready(
        residual_forward(x, prepped, out_dtype=jnp.bfloat16))
    assert out_bf16.dtype == jnp.bfloat16
    assert jnp.allclose(out_bf16.astype(jnp.float32), ref_bf16, rtol=8e-2, atol=8e-2)

    # 3) f32 MXU path, ragged row count.  Tolerance is loose-ish because the XLA
    #    reference's f32 matmul may itself use bf16 passes at DEFAULT precision.
    prepped_f32 = prepare_params(params, mxu_dtype=jnp.float32)
    out_f32 = jax.block_until_ready(residual_forward(x[:100], prepped_f32))
    ref_small = residual_reference(x[:100], params, mxu_dtype=jnp.float32)
    assert out_f32.shape == (100, F)
    assert jnp.allclose(out_f32, ref_small, rtol=2e-2, atol=2e-2), \
        f"f32 path: max abs diff {jnp.max(jnp.abs(out_f32 - ref_small))}"

    # 4) large-F fallback (streamed weight slabs, K-reduction grid axis), forced at a
    #    small F with tk=128 so the accumulator crosses multiple K steps.
    N2, F2 = 200, 256
    x2 = jax.random.normal(jax.random.PRNGKey(1), (N2, F2), jnp.float32)
    params2 = make_params(jax.random.PRNGKey(2), F2)
    prepped2 = prepare_params(params2)
    out_t = jax.block_until_ready(
        residual_forward(x2, prepped2, force_tiled=True, tk=128))
    ref_t = residual_reference(x2, params2, mxu_dtype=jnp.bfloat16)
    assert jnp.allclose(out_t, ref_t, rtol=5e-2, atol=5e-2), \
        f"tiled path: max abs diff {jnp.max(jnp.abs(out_t - ref_t))}"

    print("KERNEL_OK")
</pallas_src>

<mosaic_0001>
module attributes {stable_mosaic.version = 11 : i64} {
  func.func @residual_fused_kernel(%arg0: i32, %arg1: memref<504x128xf32, #tpu.memory_space<vmem>>, %arg2: memref<128x128xbf16, #tpu.memory_space<vmem>>, %arg3: memref<128x128xbf16, #tpu.memory_space<vmem>>, %arg4: memref<8x128xf32, #tpu.memory_space<vmem>>, %arg5: memref<504x128xf32, #tpu.memory_space<vmem>>) attributes {dimension_semantics = [#tpu.dimension_semantics<parallel>], iteration_bounds = array<i64: 1>, scalar_prefetch = 0 : i64, scratch_operands = 0 : i64, tpu.core_type = #tpu.core_type<tc>, window_params = [{transform_indices = @transform_0, window_bounds = array<i64: 504, 128>}, {pipeline_mode = #tpu.pipeline_mode<synchronous>, transform_indices = @transform_1, window_bounds = array<i64: 128, 128>}, {pipeline_mode = #tpu.pipeline_mode<synchronous>, transform_indices = @transform_2, window_bounds = array<i64: 128, 128>}, {pipeline_mode = #tpu.pipeline_mode<synchronous>, transform_indices = @transform_3, window_bounds = array<i64: 8, 128>}, {transform_indices = @transform_4, window_bounds = array<i64: 504, 128>}]} {
    %c0 = arith.constant 0 : index
    %c0_0 = arith.constant 0 : index
    %0 = vector.load %arg1[%c0, %c0_0] : memref<504x128xf32, #tpu.memory_space<vmem>>, vector<504x128xf32>
    %c0_1 = arith.constant 0 : index
    %c0_2 = arith.constant 0 : index
    %1 = vector.load %arg4[%c0_1, %c0_2] : memref<8x128xf32, #tpu.memory_space<vmem>>, vector<1x128xf32>
    %c1 = arith.constant 1 : index
    %c0_3 = arith.constant 0 : index
    %2 = vector.load %arg4[%c1, %c0_3] : memref<8x128xf32, #tpu.memory_space<vmem>>, vector<1x128xf32>
    %c2 = arith.constant 2 : index
    %c0_4 = arith.constant 0 : index
    %3 = vector.load %arg4[%c2, %c0_4] : memref<8x128xf32, #tpu.memory_space<vmem>>, vector<1x128xf32>
    %c3 = arith.constant 3 : index
    %c0_5 = arith.constant 0 : index
    %4 = vector.load %arg4[%c3, %c0_5] : memref<8x128xf32, #tpu.memory_space<vmem>>, vector<1x128xf32>
    %5 = vector.broadcast %2 : vector<1x128xf32> to vector<504x128xf32>
    %6 = arith.mulf %5, %0 : vector<504x128xf32>
    %7 = arith.negf %6 : vector<504x128xf32>
    %8 = math.exp %7 : vector<504x128xf32>
    %cst = arith.constant 1.000000e+00 : f32
    %9 = vector.broadcast %cst : f32 to vector<504x128xf32>
    %10 = arith.addf %9, %8 : vector<504x128xf32>
    %11 = arith.divf %9, %10 : vector<504x128xf32>
    %12 = arith.mulf %0, %11 : vector<504x128xf32>
    %13 = arith.truncf %12 : vector<504x128xf32> to vector<504x128xbf16>
    %c0_6 = arith.constant 0 : index
    %c0_7 = arith.constant 0 : index
    %14 = vector.load %arg2[%c0_6, %c0_7] : memref<128x128xbf16, #tpu.memory_space<vmem>>, vector<128x128xbf16>
    %cst_8 = arith.constant dense<0.000000e+00> : vector<504x128xf32>
    %15 = tpu.matmul %13, %14, %cst_8 {dimension_numbers = #tpu.dot_dimension_numbers<[1], [0], [0], [1], [0, 0, 1, 1], [], []>} : vector<504x128xbf16>, vector<128x128xbf16>, vector<504x128xf32> -> vector<504x128xf32>
    %16 = vector.broadcast %1 : vector<1x128xf32> to vector<504x128xf32>
    %17 = arith.addf %15, %16 : vector<504x128xf32>
    %18 = vector.broadcast %4 : vector<1x128xf32> to vector<504x128xf32>
    %19 = arith.mulf %18, %17 : vector<504x128xf32>
    %20 = arith.negf %19 : vector<504x128xf32>
    %21 = math.exp %20 : vector<504x128xf32>
    %cst_9 = arith.constant 1.000000e+00 : f32
    %22 = vector.broadcast %cst_9 : f32 to vector<504x128xf32>
    %23 = arith.addf %22, %21 : vector<504x128xf32>
    %24 = arith.divf %22, %23 : vector<504x128xf32>
    %25 = arith.mulf %17, %24 : vector<504x128xf32>
    %26 = arith.truncf %25 : vector<504x128xf32> to vector<504x128xbf16>
    %c0_10 = arith.constant 0 : index
    %c0_11 = arith.constant 0 : index
    %27 = vector.load %arg3[%c0_10, %c0_11] : memref<128x128xbf16, #tpu.memory_space<vmem>>, vector<128x128xbf16>
    %cst_12 = arith.constant dense<0.000000e+00> : vector<504x128xf32>
    %28 = tpu.matmul %26, %27, %cst_12 {dimension_numbers = #tpu.dot_dimension_numbers<[1], [0], [0], [1], [0, 0, 1, 1], [], []>} : vector<504x128xbf16>, vector<128x128xbf16>, vector<504x128xf32> -> vector<504x128xf32>
    %29 = vector.broadcast %3 : vector<1x128xf32> to vector<504x128xf32>
    %30 = arith.addf %28, %29 : vector<504x128xf32>
    %31 = arith.addf %0, %30 : vector<504x128xf32>
    %c0_13 = arith.constant 0 : index
    %c0_14 = arith.constant 0 : index
    %32 = vector.load %arg5[%c0_13, %c0_14] : memref<504x128xf32, #tpu.memory_space<vmem>>, vector<504x128xf32>
    tpu.vector_store %arg5[%c0_13, %c0_14], %31 {strides = array<i32>} : memref<504x128xf32, #tpu.memory_space<vmem>>, vector<504x128xf32>,
    return
  }
  func.func @transform_0(%arg0: i32) -> (i32, i32) {
    %c0_i32 = arith.constant 0 : i32
    %c0_i32_0 = arith.constant 0 : i32
    return %arg0, %c0_i32 : i32, i32
  }
  func.func @transform_1(%arg0: i32) -> (i32, i32) {
    %c0_i32 = arith.constant 0 : i32
    %c0_i32_0 = arith.constant 0 : i32
    %c0_i32_1 = arith.constant 0 : i32
    return %c0_i32, %c0_i32_0 : i32, i32
  }
  func.func @transform_2(%arg0: i32) -> (i32, i32) {
    %c0_i32 = arith.constant 0 : i32
    %c0_i32_0 = arith.constant 0 : i32
    %c0_i32_1 = arith.constant 0 : i32
    return %c0_i32, %c0_i32_0 : i32, i32
  }
  func.func @transform_3(%arg0: i32) -> (i32, i32) {
    %c0_i32 = arith.constant 0 : i32
    %c0_i32_0 = arith.constant 0 : i32
    %c0_i32_1 = arith.constant 0 : i32
    return %c0_i32, %c0_i32_0 : i32, i32
  }
  func.func @transform_4(%arg0: i32) -> (i32, i32) {
    %c0_i32 = arith.constant 0 : i32
    %c0_i32_0 = arith.constant 0 : i32
    return %arg0, %c0_i32 : i32, i32
  }
}

</mosaic_0001>

<bundles_post_ra>
// kernel: tpu_custom_call.1
= control target key start
LH: loop header
LB: loop body
LE: loop exit
PB: predicated region body
PF: predicated region fallthrough
CT: control target
= control target key end

     0   :  { %9 = vsyncpa [#allocation3], 0  ;;  %s3990_s0 = inlined_call_operand.hbm [shape: f32[500,128], index: 0, kind: input, shape index: {}]   ;;  %s3991_s1 = inlined_call_operand.hbm [shape: bf16[128,128], index: 1, kind: input, shape index: {}]   ;;  %s3992_s2 = inlined_call_operand.hbm [shape: bf16[128,128], index: 2, kind: input, shape index: {}]   ;;  %s3993_s3 = inlined_call_operand.hbm [shape: f32[8,128], index: 3, kind: input, shape index: {}]   ;;  %s3994_s4 = inlined_call_operand.hbm [shape: f32[500,128], index: 4, kind: output, shape index: {}]  }
   0x1   :  { %10 = vsyncpa [#allocation6], 0 }
   0x2   :  { %11 = vsyncpa [#allocation9], 0 }
   0x3   :  { %12 = vsyncpa [#allocation4], 0  ;;  %s3165_s15 = smov [#allocation5]  }
   0x4   :  { %s30_s16 = sshll.u32 %s3165_s15, 4  ;;  %s31_s16 = int_to_ptr.vmem [resolvable:$true] %s30_s16 }
   0x5   :  { %s3065_s17 = scalar_lea.vmem %s31_s16, 1024  ;;  %p3070_p1 = scmp.lt.s32.totalorder %s31_s16, %s31_s16 }
   0x6   :  { %p3066_p0 = scmp.ne.s32.totalorder %s31_s16, %s3065_s17  ;;  %p3071_p2 = scmp.lt.s32.totalorder %s3065_s17, %s3065_s17 }
   0x8   :  { %p3072_p3 = por %p3071_p2, %p3070_p1 }
   0xa   :  { %p3073_p4 = pnand %p3072_p3, %p3066_p0 }
   0xc   :  { %3076 = shalt.err (!%p3073_p4)
}
   0xd   :  { %s3166_s18 = smov 64   ;;  %s3167_s19 = smov 4  }
   0xe   :  { %36 = dma.hbm_to_vmem [thread:$0]  %s3991_s1, 1024, %s31_s16, [#allocation6], %s3166_s18, %s3166_s18, %s3167_s19  }
   0xf   :  { %s3168_s22 = smov [#allocation2]  }
  0x10   :  { %s18_s23 = sshll.u32 %s3168_s22, 4  ;;  %s19_s23 = int_to_ptr.vmem [resolvable:$true] %s18_s23 }
  0x11   :  { %s3085_s24 = scalar_lea.vmem %s19_s23, 8064  ;;  %p3090_p6 = scmp.lt.s32.totalorder %s19_s23, %s19_s23 }
  0x12   :  { %p3086_p5 = scmp.ne.s32.totalorder %s19_s23, %s3085_s24  ;;  %p3091_p7 = scmp.lt.s32.totalorder %s3085_s24, %s3085_s24 }
  0x14   :  { %p3092_p8 = por %p3091_p7, %p3090_p6 }
  0x16   :  { %p3093_p9 = pnand %p3092_p8, %p3086_p5 }
  0x18   :  { %3096 = shalt.err (!%p3093_p9)
}
  0x19   :  { %s3169_s25 = smov 128   ;;  %s3170_s26 = smov 8  }
  0x1a   :  { %24 = dma.hbm_to_vmem [thread:$0]  %s3990_s0, 8064, %s19_s23, [#allocation3], %s3169_s25, %s3169_s25, %s3170_s26  }
  0x1b   :  { %s3171_s1 = smov [#allocation7]   ;;  %s3172_s30 = smov [#allocation8]  }
  0x1c   :  { %s42_s29 = sshll.u32 %s3171_s1, 4  ;;  %s55_s5 = sshll.u32 %s3172_s30, 4  ;;  %s43_s29 = int_to_ptr.vmem [resolvable:$true] %s42_s29  ;;  %s56_s5 = int_to_ptr.vmem [resolvable:$true] %s55_s5 }
  0x1d   :  { %s3105_s6 = scalar_lea.vmem %s43_s29, 1024  ;;  %p3110_p11 = scmp.lt.s32.totalorder %s43_s29, %s43_s29 }
  0x1e   :  { %p3106_p10 = scmp.ne.s32.totalorder %s43_s29, %s3105_s6  ;;  %p3111_p12 = scmp.lt.s32.totalorder %s3105_s6, %s3105_s6 }
  0x20   :  { %p3112_p13 = por %p3111_p12, %p3110_p11 }
  0x22   :  { %p3113_p0 = pnand %p3112_p13, %p3106_p10 }
  0x24   :  { %3116 = shalt.err (!%p3113_p0)
}
  0x25   :  { %48 = dma.hbm_to_vmem [thread:$0]  %s3992_s2, 1024, %s43_s29, [#allocation6], %s3166_s18, %s3166_s18, %s3167_s19  }
  0x26   :  { %s3125_s0 = scalar_lea.vmem %s56_s5, 128  ;;  %p3130_p2 = scmp.lt.s32.totalorder %s56_s5, %s56_s5 }
  0x27   :  { %p3126_p1 = scmp.ne.s32.totalorder %s56_s5, %s3125_s0  ;;  %p3131_p3 = scmp.lt.s32.totalorder %s3125_s0, %s3125_s0 }
  0x29   :  { %p3132_p4 = por %p3131_p3, %p3130_p2 }
  0x2b   :  { %p3133_p5 = pnand %p3132_p4, %p3126_p1 }
  0x2d   :  { %3136 = shalt.err (!%p3133_p5)
}
  0x2e   :  { %58 = dma.hbm_to_vmem [thread:$0]  %s3993_s3, 128, %s56_s5, [#allocation9]  }
  0x2f   :  { %3157 = dma.done.wait [#allocation3], 8064  }
  0x30   :  { %3158 = vsyncadd [#allocation3], 4294959232 }
  0x31   :  { %3159 = dma.done.wait [#allocation6], 2048  }
  0x32   :  { %3160 = vsyncadd [#allocation6], 4294965248 }
  0x33   :  { %3161 = dma.done.wait [#allocation9], 128  }
  0x34   :  { %3162 = vsyncadd [#allocation9], 4294967168  ;;  %v2471_v0 = vld [vmem:[#allocation5 + $0x38] sm:$0xff]   ;;  %v2472_v1 = vld [vmem:[#allocation5 + $0x30] sm:$0xff]   ;;  %s3173_s2 = smov [#allocation10]  }
  0x35   :  { %2302 = vmatprep.subr.bf16.mxu0 %v2471_v0  ;;  %v2473_v2 = vld [vmem:[#allocation5 + $0x28] sm:$0xff]   ;;  %v2474_v3 = vld [vmem:[#allocation5 + $0x20] sm:$0xff]   ;;  %v3222_v5 = vld [vmem:[#allocation2 + $0x8] sm:$0xff]  ;;  %s2062_s3 = sshll.u32 %s3173_s2, 4  ;;  %s2063_s3 = int_to_ptr.vmem [resolvable:$true] %s2062_s3 }
  0x36   :  { %2303 = vmatpush3.bf16.msra.mxu0 %v2471_v0  ;;  %v3220_v4 = vld [vmem:[#allocation2] sm:$0xff]  ;;  %v3224_v6 = vld [vmem:[#allocation8 + $0x1] ss:$0 sm:$0xff]  ;;  %v3230_v9 = vld [vmem:[#allocation2 + $0x10] sm:$0xff]  ;;  %s3137_s11 = scalar_lea.vmem %s2063_s3, 8064  ;;  %p3142_p7 = scmp.lt.s32.totalorder %s2063_s3, %s2063_s3 }
  0x37   :  { %2304 = vmatprep.subr.bf16.mxu0 %v2472_v1  ;;  %v143_v7 = vmul.f32 %v3224_v6, %v3220_v4  ;;  %v144_v8 = vmul.f32 %v3224_v6, %v3222_v5  ;;  %v3232_v10 = vld [vmem:[#allocation2 + $0x18] sm:$0xff]  ;;  %v3234_v11 = vld [vmem:[#allocation2 + $0x20] sm:$0xff]  ;;  %v145_v12 = vmul.f32 %v3224_v6, %v3230_v9  ;;  %v3240_v14 = vld [vmem:[#allocation2 + $0x28] sm:$0xff]  ;;  %p3138_p6 = scmp.ne.s32.totalorder %s2063_s3, %s3137_s11  ;;  %p3143_p8 = scmp.lt.s32.totalorder %s3137_s11, %s3137_s11 }
  0x38   :  { %v146_v13 = vmul.f32 %v3224_v6, %v3232_v10  ;;  %v147_v15 = vmul.f32 %v3224_v6, %v3234_v11  ;;  %v3244_v16 = vld [vmem:[#allocation2 + $0x30] sm:$0xff]  ;;  %v3246_v17 = vld [vmem:[#allocation2 + $0x38] sm:$0xff]  ;;  %v148_v20 = vmul.f32 %v3224_v6, %v3240_v14  ;;  %v3252_v22 = vld [vmem:[#allocation2 + $0x40] sm:$0xff] }
  0x39   :  { %v2077_v18 = vmul.f32 -1.442695, %v143_v7  ;;  %v2078_v19 = vmul.f32 -1.442695, %v144_v8  ;;  %v149_v21 = vmul.f32 %v3224_v6, %v3244_v16  ;;  %v3254_v23 = vld [vmem:[#allocation2 + $0x48] sm:$0xff]  ;;  %v2475_v24 = vld [vmem:[#allocation5 + $0x18] sm:$0xff]   ;;  %v150_v27 = vmul.f32 %v3224_v6, %v3246_v17  ;;  %p3144_p9 = por %p3143_p8, %p3142_p7 }
  0x3a   :  { %2305 = vmatpush3.bf16.msra.mxu0 %v2472_v1  ;;  %v2079_v25 = vmul.f32 -1.442695, %v145_v12  ;;  %v2080_v26 = vmul.f32 -1.442695, %v146_v13  ;;  %v2081_v28 = vmul.f32 -1.442695, %v147_v15  ;;  %v151_v29 = vmul.f32 %v3224_v6, %v3252_v22 }
  0x3b   :  { %2306 = vmatprep.subr.bf16.mxu0 %v2473_v2  ;;  %2487 = vpow2.f32 %v2077_v18  ;;  %v3260_v30 = vld [vmem:[#allocation2 + $0x50] sm:$0xff]  ;;  %v3262_v31 = vld [vmem:[#allocation2 + $0x58] sm:$0xff]  ;;  %v2082_v32 = vmul.f32 -1.442695, %v148_v20  ;;  %v152_v33 = vmul.f32 %v3224_v6, %v3254_v23  ;;  %v3266_v34 = vld [vmem:[#allocation2 + $0x60] sm:$0xff]  ;;  %p3145_p10 = pnand %p3144_p9, %p3138_p6 }
  0x3c   :  { %2489 = vpow2.f32 %v2078_v19  ;;  %v2083_v35 = vmul.f32 -1.442695, %v149_v21  ;;  %v153_v36 = vmul.f32 %v3224_v6, %v3260_v30  ;;  %v3270_v37 = vld [vmem:[#allocation2 + $0x68] sm:$0xff]  ;;  %v2084_v39 = vmul.f32 -1.442695, %v150_v27  ;;  %v3274_v41 = vld [vmem:[#allocation2 + $0x70] sm:$0xff] }
  0x3d   :  { %2491 = vpow2.f32 %v2079_v25  ;;  %v2476_v38 = vld [vmem:[#allocation5 + $0x10] sm:$0xff]   ;;  %v154_v40 = vmul.f32 %v3224_v6, %v3262_v31  ;;  %v2085_v42 = vmul.f32 -1.442695, %v151_v29  ;;  %v155_v43 = vmul.f32 %v3224_v6, %v3266_v34  ;;  %v3278_v44 = vld [vmem:[#allocation2 + $0x78] sm:$0xff]  ;;  %v2477_v49 = vld [vmem:[#allocation5 + $0x8] sm:$0xff]  }
  0x3e   :  { %2307 = vmatpush3.bf16.msra.mxu0 %v2473_v2  ;;  %2493 = vpow2.f32 %v2080_v26  ;;  %v2086_v45 = vmul.f32 -1.442695, %v152_v33  ;;  %v156_v46 = vmul.f32 %v3224_v6, %v3270_v37  ;;  %v2087_v47 = vmul.f32 -1.442695, %v153_v36  ;;  %v2478_v55 = vld [vmem:[#allocation5] sm:$0xff]   ;;  %v3286_v12 = vld [vmem:[#allocation2 + $0x80] sm:$0xff] }
  0x3f   :  { %2308 = vmatprep.subr.bf16.mxu0 %v2474_v3  ;;  %2495 = vpow2.f32 %v2081_v28  ;;  %v157_v48 = vmul.f32 %v3224_v6, %v3274_v41  ;;  %v2088_v50 = vmul.f32 -1.442695, %v154_v40  ;;  %v158_v51 = vmul.f32 %v3224_v6, %v3278_v44  ;;  %v3288_v20 = vld [vmem:[#allocation2 + $0x88] sm:$0xff]  ;;  %v3292_v26 = vld [vmem:[#allocation2 + $0x90] sm:$0xff]  ;;  %v3294_v29 = vld [vmem:[#allocation2 + $0x98] sm:$0xff] }
  0x40   :  { %2497 = vpow2.f32 %v2082_v32  ;;  %v2089_v52 = vmul.f32 -1.442695, %v155_v43  ;;  %v2090_v53 = vmul.f32 -1.442695, %v156_v46  ;;  %v159_v25 = vmul.f32 %v3224_v6, %v3286_v12  ;;  %v3298_v36 = vld [vmem:[#allocation2 + $0xa0] sm:$0xff]  ;;  %v3304_v43 = vld [vmem:[#allocation2 + $0xb0] sm:$0xff] }
  0x41   :  { %2499 = vpow2.f32 %v2083_v35  ;;  %v2091_v54 = vmul.f32 -1.442695, %v157_v48  ;;  %v2092_v56 = vmul.f32 -1.442695, %v158_v51  ;;  %v160_v35 = vmul.f32 %v3224_v6, %v3288_v20 }
  0x42   :  { %2309 = vmatpush3.bf16.msra.mxu0 %v2474_v3  ;;  %2501 = vpow2.f32 %v2084_v39  ;;  %v162_v48 = vmul.f32 %v3224_v6, %v3294_v29 }
  0x43   :  { %2310 = vmatprep.subr.bf16.mxu0 %v2475_v24  ;;  %2503 = vpow2.f32 %v2085_v42  ;;  %v161_v42 = vmul.f32 %v3224_v6, %v3292_v26 }
  0x44   :  { %2505 = vpow2.f32 %v2086_v45 }
  0x45   :  { %2507 = vpow2.f32 %v2087_v47  ;;  %v2093_v47 = vmul.f32 -1.442695, %v159_v25 }
  0x46   :  { %2311 = vmatpush3.bf16.msra.mxu0 %v2475_v24  ;;  %2509 = vpow2.f32 %v2088_v50 }
  0x47   :  { %2312 = vmatprep.subr.bf16.mxu0 %v2476_v38  ;;  %2511 = vpow2.f32 %v2089_v52  ;;  %v163_v52 = vmul.f32 %v3224_v6, %v3298_v36 }
  0x48   :  { %v2488_v57 = vpop.eup %2487  ;;  %2513 = vpow2.f32 %v2090_v53 }
  0x49   :  { %v2490_v58 = vpop.eup %2489  ;;  %v395_v59 = vadd.f32 1.0, %v2488_v57  ;;  %2515 = vpow2.f32 %v2091_v54  ;;  %v3314_v54 = vld [vmem:[#allocation2 + $0xc0] sm:$0xff]  ;;  %v2094_v57 = vmul.f32 -1.442695, %v160_v35 }
  0x4a   :  { %2313 = vmatpush3.bf16.msra.mxu0 %v2476_v38  ;;  %v2492_v60 = vpop.eup %2491  ;;  %v396_v61 = vadd.f32 1.0, %v2490_v58  ;;  %2517 = vpow2.f32 %v2092_v56  ;;  %v3300_v38 = vld [vmem:[#allocation2 + $0xa8] sm:$0xff]  ;;  %v165_v58 = vmul.f32 %v3224_v6, %v3304_v43 }
  0x4b   :  { %2314 = vmatprep.subr.bf16.mxu0 %v2477_v49  ;;  %v2494_v62 = vpop.eup %2493  ;;  %2519 = vrcp.f32 %v395_v59  ;;  %v397_v63 = vadd.f32 1.0, %v2492_v60  ;;  %v164_v53 = vmul.f32 %v3224_v6, %v3300_v38  ;;  %v3318_v59 = vld [vmem:[#allocation2 + $0xc8] sm:$0xff] }
  0x4c   :  { %v2496_v0 = vpop.eup %2495  ;;  %2521 = vrcp.f32 %v396_v61  ;;  %v398_v1 = vadd.f32 1.0, %v2494_v62  ;;  %v2095_v62 = vmul.f32 -1.442695, %v161_v42 }
  0x4d   :  { %v2498_v2 = vpop.eup %2497  ;;  %2523 = vrcp.f32 %v397_v63  ;;  %v399_v3 = vadd.f32 1.0, %v2496_v0  ;;  %v3322_v0 = vld [vmem:[#allocation2 + $0xd0] sm:$0xff] }
  0x4e   :  { %2315 = vmatpush3.bf16.msra.mxu0 %v2477_v49  ;;  %v2500_v7 = vpop.eup %2499  ;;  %2525 = vrcp.f32 %v398_v1  ;;  %v400_v8 = vadd.f32 1.0, %v2498_v2  ;;  %v3308_v49 = vld [vmem:[#allocation2 + $0xb8] sm:$0xff] }
  0x4f   :  { %2316 = vmatprep.subr.bf16.mxu0 %v2478_v55  ;;  %v2502_v13 = vpop.eup %2501  ;;  %2527 = vrcp.f32 %v399_v3  ;;  %v401_v15 = vadd.f32 1.0, %v2500_v7  ;;  %v166_v63 = vmul.f32 %v3224_v6, %v3308_v49  ;;  %v2096_v3 = vmul.f32 -1.442695, %v162_v48 }
  0x50   :  { %v2504_v18 = vpop.eup %2503  ;;  %2529 = vrcp.f32 %v400_v8  ;;  %v402_v19 = vadd.f32 1.0, %v2502_v13  ;;  %v167_v7 = vmul.f32 %v3224_v6, %v3314_v54  ;;  %v3327_v8 = vld [vmem:[#allocation2 + $0xd8] sm:$0xff] }
  0x51   :  { %v2506_v21 = vpop.eup %2505  ;;  %2531 = vrcp.f32 %v401_v15  ;;  %v403_v24 = vadd.f32 1.0, %v2504_v18  ;;  %v2097_v18 = vmul.f32 -1.442695, %v163_v52  ;;  %v170_v48 = vmul.f32 %v3224_v6, %v3327_v8 }
  0x52   :  { %2317 = vmatpush3.bf16.msra.mxu0 %v2478_v55  ;;  %v2508_v27 = vpop.eup %2507  ;;  %2533 = vrcp.f32 %v402_v19  ;;  %v404_v28 = vadd.f32 1.0, %v2506_v21  ;;  %v2098_v19 = vmul.f32 -1.442695, %v164_v53  ;;  %v3330_v21 = vld [vmem:[#allocation2 + $0xe0] sm:$0xff]  ;;  %v2101_v42 = vmul.f32 -1.442695, %v167_v7 }
  0x53   :  { %v2510_v32 = vpop.eup %2509  ;;  %2535 = vrcp.f32 %v403_v24  ;;  %v405_v33 = vadd.f32 1.0, %v2508_v27  ;;  %v3332_v24 = vld [vmem:[#allocation2 + $0xe8] sm:$0xff]  ;;  %v2099_v27 = vmul.f32 -1.442695, %v165_v58  ;;  %v3350_v53 = vld [vmem:[#allocation2 + $0xf8] sm:$0xff] }
  0x54   :  { %v2512_v39 = vpop.eup %2511  ;;  %2537 = vrcp.f32 %v404_v28  ;;  %v406_v40 = vadd.f32 1.0, %v2510_v32  ;;  %v168_v28 = vmul.f32 %v3224_v6, %v3318_v59  ;;  %v172_v52 = vmul.f32 %v3224_v6, %v3332_v24 }
  0x55   :  { %v2514_v45 = vpop.eup %2513  ;;  %2539 = vrcp.f32 %v405_v33  ;;  %v407_v46 = vadd.f32 1.0, %v2512_v39 }
  0x56   :  { %v2516_v50 = vpop.eup %2515  ;;  %2541 = vrcp.f32 %v406_v40  ;;  %v408_v51 = vadd.f32 1.0, %v2514_v45  ;;  %v169_v45 = vmul.f32 %v3224_v6, %v3322_v0 }
  0x57   :  { %v2518_v55 = vpop.eup %2517  ;;  %2543 = vrcp.f32 %v407_v46  ;;  %v409_v56 = vadd.f32 1.0, %v2516_v50 }
  0x58   :  { %v2520_v60 = vpop.eup %2519  ;;  %2545 = vrcp.f32 %v408_v51  ;;  %v410_v61 = vadd.f32 1.0, %v2518_v55  ;;  %v2102_v51 = vmul.f32 -1.442695, %v168_v28 }
  0x59   :  { %v2522_v1 = vpop.eup %2521  ;;  %v584_v2 = vmul.f32 %v2520_v60, %v3220_v4  ;;  %2547 = vrcp.f32 %v409_v56 }
  0x5a   :  { %v2524_v13 = vpop.eup %2523  ;;  %v585_v15 = vmul.f32 %v2522_v1, %v3222_v5  ;;  %2549 = vrcp.f32 %v410_v61  ;;  %v2100_v5 = vmul.f32 -1.442695, %v166_v63  ;;  %v2103_v61 = vmul.f32 -1.442695, %v169_v45 }
  0x5b   :  { %v2526_v25 = vpop.eup %2525  ;;  %v586_v4 = vmul.f32 %v2524_v13, %v3230_v9  ;;  %2551 = vpow2.f32 %v2093_v47 }
  0x5c   :  { %v2528_v32 = vpop.eup %2527  ;;  %v647_v33 = vpack.c.bf16 %v585_v15, %v584_v2  ;;  %v587_v35 = vmul.f32 %v2526_v25, %v3232_v10  ;;  %2553 = vpow2.f32 %v2094_v57  ;;  %v3344_v10 = vld [vmem:[#allocation2 + $0xf0] sm:$0xff]  ;;  %v2104_v2 = vmul.f32 -1.442695, %v170_v48 }
  0x5d   :  { %v2530_v39 = vpop.eup %2529  ;;  %v588_v40 = vmul.f32 %v2528_v32, %v3234_v11  ;;  %2555 = vpow2.f32 %v2095_v62  ;;  %v171_v11 = vmul.f32 %v3224_v6, %v3330_v21  ;;  %v173_v62 = vmul.f32 %v3224_v6, %v3344_v10 }
  0x5e   :  { %v2532_v9 = vpop.eup %2531  ;;  %2318 = vmatprep.mubr.bf16.mxu0 %v647_v33  ;;  %v648_v46 = vpack.c.bf16 %v587_v35, %v586_v4  ;;  %v589_v47 = vmul.f32 %v2530_v39, %v3240_v14  ;;  %2557 = vpow2.f32 %v2096_v3 }
  0x5f   :  { %v2534_v50 = vpop.eup %2533  ;;  %2559 = vpow2.f32 %v2097_v18  ;;  %v590_v56 = vmul.f32 %v2532_v9, %v3244_v16  ;;  %v174_v16 = vmul.f32 %v3224_v6, %v3350_v53 }
  0x60   :  { %v2536_v55 = vpop.eup %2535  ;;  %2319 = vmatmul.mubr.bf16.vlgmr.msra.gmra.mxu0 %v648_v46  ;;  %v649_v14 = vpack.c.bf16 %v589_v47, %v588_v40  ;;  %v591_v57 = vmul.f32 %v2534_v50, %v3246_v17  ;;  %2561 = vpow2.f32 %v2098_v19  ;;  %v2105_v17 = vmul.f32 -1.442695, %v171_v11 }
  0x61   :  { %v2538_v58 = vpop.eup %2537  ;;  %v592_v60 = vmul.f32 %v2536_v55, %v3252_v22  ;;  %2563 = vpow2.f32 %v2099_v27  ;;  %v2106_v22 = vmul.f32 -1.442695, %v172_v52  ;;  %v2107_v19 = vmul.f32 -1.442695, %v173_v62 }
  0x62   :  { %v2540_v63 = vpop.eup %2539  ;;  %2322 = vmatprep.mubr.bf16.mxu0 %v649_v14  ;;  %v593_v1 = vmul.f32 %v2538_v58, %v3254_v23  ;;  %2565 = vpow2.f32 %v2100_v5  ;;  %v650_v13 = vpack.c.bf16 %v591_v57, %v590_v56  ;;  %v2108_v4 = vmul.f32 -1.442695, %v174_v16  ;;  %v3368_v58 = vld [vmem:[#allocation2 + $0x108] sm:$0xff]  ;;  %v3374_v16 = vld [vmem:[#allocation2 + $0x118] sm:$0xff] }
  0x63   :  { %v2542_v3 = vpop.eup %2541  ;;  %2567 = vpow2.f32 %v2101_v42  ;;  %v594_v28 = vmul.f32 %v2540_v63, %v3260_v30  ;;  %v3372_v63 = vld [vmem:[#allocation2 + $0x110] sm:$0xff] }
  0x64   :  { %v2544_v7 = vpop.eup %2543  ;;  %2569 = vpow2.f32 %v2102_v51  ;;  %v651_v18 = vpack.c.bf16 %v593_v1, %v592_v60  ;;  %v595_v32 = vmul.f32 %v2542_v3, %v3262_v31  ;;  %v176_v3 = vmul.f32 %v3224_v6, %v3368_v58 }
  0x65   :  { %v2546_v15 = vpop.eup %2545  ;;  %2571 = vpow2.f32 %v2103_v61  ;;  %v596_v35 = vmul.f32 %v2544_v7, %v3266_v34  ;;  %v3380_v7 = vld [vmem:[#allocation2 + $0x128] sm:$0xff] }
  0x66   :  { %v2548_v25 = vpop.eup %2547  ;;  %2573 = vpow2.f32 %v2104_v2  ;;  %v597_v5 = vmul.f32 %v2546_v15, %v3270_v37  ;;  %v652_v47 = vpack.c.bf16 %v595_v32, %v594_v28  ;;  %v3364_v37 = vld [vmem:[#allocation2 + $0x100] sm:$0xff]  ;;  %v3388_v28 = vld [vmem:[#allocation2 + $0x138] sm:$0xff] }
  0x67   :  { %v2550_v23 = vpop.eup %2549  ;;  %2575 = vpow2.f32 %v2105_v17  ;;  %v598_v14 = vmul.f32 %v2548_v25, %v3274_v41  ;;  %v175_v62 = vmul.f32 %v3224_v6, %v3364_v37  ;;  %v3378_v17 = vld [vmem:[#allocation2 + $0x120] sm:$0xff] }
  0x68   :  { %v2552_v27 = vpop.eup %2551  ;;  %2323 = vmatmul.mubr.bf16.gmra.mxu0 %v650_v13  ;;  %2577 = vpow2.f32 %v2106_v22  ;;  %v653_v48 = vpack.c.bf16 %v597_v5, %v596_v35  ;;  %v599_v56 = vmul.f32 %v2550_v23, %v3278_v44  ;;  %v179_v35 = vmul.f32 %v3224_v6, %v3378_v17 }
  0x69   :  { %v2554_v33 = vpop.eup %2553  ;;  %2326 = vmatprep.mubr.bf16.mxu0 %v651_v18  ;;  %v411_v39 = vadd.f32 1.0, %v2552_v27  ;;  %2579 = vpow2.f32 %v2107_v19  ;;  %v177_v18 = vmul.f32 %v3224_v6, %v3372_v63  ;;  %v3384_v19 = vld [vmem:[#allocation2 + $0x130] sm:$0xff]  ;;  %v2109_v23 = vmul.f32 -1.442695, %v175_v62 }
  0x6a   :  { %v2556_v40 = vpop.eup %2555  ;;  %v412_v42 = vadd.f32 1.0, %v2554_v33  ;;  %2581 = vpow2.f32 %v2108_v4  ;;  %v654_v22 = vpack.c.bf16 %v599_v56, %v598_v14  ;;  %v178_v27 = vmul.f32 %v3224_v6, %v3374_v16 }
  0x6b   :  { %v2558_v45 = vpop.eup %2557  ;;  %2583 = vrcp.f32 %v411_v39  ;;  %v413_v9 = vadd.f32 1.0, %v2556_v40  ;;  %v180_v5 = vmul.f32 %v3224_v6, %v3380_v7  ;;  %v3394_v39 = vld [vmem:[#allocation2 + $0x140] sm:$0xff]  ;;  %v2113_v14 = vmul.f32 -1.442695, %v179_v35 }
  0x6c   :  { %v2560_v46 = vpop.eup %2559  ;;  %2585 = vrcp.f32 %v412_v42  ;;  %v414_v30 = vadd.f32 1.0, %v2558_v45  ;;  %v2110_v45 = vmul.f32 -1.442695, %v176_v3  ;;  %v3414_v3 = vld [vmem:[#allocation2 + $0x160] sm:$0xff] }
  0x6d   :  { %v2562_v31 = vpop.eup %2561  ;;  %2587 = vrcp.f32 %v413_v9  ;;  %v415_v50 = vadd.f32 1.0, %v2560_v46  ;;  %v181_v9 = vmul.f32 %v3224_v6, %v3384_v19  ;;  %v2114_v56 = vmul.f32 -1.442695, %v180_v5  ;;  %v3430_v5 = vld [vmem:[#allocation2 + $0x178] sm:$0xff] }
  0x6e   :  { %v2564_v51 = vpop.eup %2563  ;;  %2589 = vrcp.f32 %v414_v30  ;;  %v416_v34 = vadd.f32 1.0, %v2562_v31  ;;  %v2111_v30 = vmul.f32 -1.442695, %v177_v18  ;;  %v182_v31 = vmul.f32 %v3224_v6, %v3388_v28 }
  0x6f   :  { %v2566_v11 = vpop.eup %2565  ;;  %2591 = vrcp.f32 %v415_v50  ;;  %v417_v52 = vadd.f32 1.0, %v2564_v51  ;;  %v2115_v62 = vmul.f32 -1.442695, %v181_v9 }
  0x70   :  { %v2568_v55 = vpop.eup %2567  ;;  %2327 = vmatmul.mubr.bf16.gmra.mxu0 %v652_v47  ;;  %2593 = vrcp.f32 %v416_v34  ;;  %v418_v57 = vadd.f32 1.0, %v2566_v11  ;;  %v2112_v34 = vmul.f32 -1.442695, %v178_v27  ;;  %v183_v11 = vmul.f32 %v3224_v6, %v3394_v39  ;;  %v3424_v27 = vld [vmem:[#allocation2 + $0x170] sm:$0xff] }
  0x71   :  { %v2570_v60 = vpop.eup %2569  ;;  %2330 = vmatprep.mubr.bf16.mxu0 %v653_v48  ;;  %2595 = vrcp.f32 %v417_v52  ;;  %v419_v61 = vadd.f32 1.0, %v2568_v55  ;;  %v3400_v48 = vld [vmem:[#allocation2 + $0x148] sm:$0xff] }
  0x72   :  { %v2572_v1 = vpop.eup %2571  ;;  %2597 = vrcp.f32 %v418_v57  ;;  %v420_v2 = vadd.f32 1.0, %v2570_v60  ;;  %v3406_v57 = vld [vmem:[#allocation2 + $0x150] sm:$0xff] }
  0x73   :  { %v2574_v41 = vpop.eup %2573  ;;  %2599 = vrcp.f32 %v419_v61  ;;  %v421_v44 = vadd.f32 1.0, %v2572_v1  ;;  %v3411_v1 = vld [vmem:[#allocation2 + $0x158] sm:$0xff]  ;;  %v185_v18 = vmul.f32 %v3224_v6, %v3406_v57 }
  0x74   :  { %v2576_v13 = vpop.eup %2575  ;;  %2601 = vrcp.f32 %v420_v2  ;;  %v422_v15 = vadd.f32 1.0, %v2574_v41 }
  0x75   :  { %v2578_v25 = vpop.eup %2577  ;;  %2603 = vrcp.f32 %v421_v44  ;;  %v423_v4 = vadd.f32 1.0, %v2576_v13  ;;  %v3416_v13 = vld [vmem:[#allocation2 + $0x168] sm:$0xff] }
  0x76   :  { %v2580_v32 = vpop.eup %2579  ;;  %2605 = vrcp.f32 %v422_v15  ;;  %v424_v33 = vadd.f32 1.0, %v2578_v25  ;;  %v2117_v15 = vmul.f32 -1.442695, %v183_v11  ;;  %v188_v35 = vmul.f32 %v3224_v6, %v3416_v13 }
  0x77   :  { %v2582_v40 = vpop.eup %2581  ;;  %2607 = vrcp.f32 %v423_v4  ;;  %v425_v42 = vadd.f32 1.0, %v2580_v32 }
  0x78   :  { %v2584_v46 = vpop.eup %2583  ;;  %2331 = vmatmul.mubr.bf16.gmra.mxu0 %v654_v22  ;;  %2609 = vrcp.f32 %v424_v33  ;;  %v426_v47 = vadd.f32 1.0, %v2582_v40 }
  0x79   :  { %v2586_v50 = vpop.eup %2585  ;;  %v600_v51 = vmul.f32 %v2584_v46, %v3286_v12  ;;  %2611 = vrcp.f32 %v425_v42  ;;  %v184_v12 = vmul.f32 %v3224_v6, %v3400_v48 }
  0x7a   :  { %v2588_v52 = vpop.eup %2587  ;;  %v601_v55 = vmul.f32 %v2586_v50, %v3288_v20  ;;  %2613 = vrcp.f32 %v426_v47  ;;  %v2116_v20 = vmul.f32 -1.442695, %v182_v31  ;;  %v2119_v47 = vmul.f32 -1.442695, %v185_v18 }
  0x7b   :  { %v2590_v60 = vpop.eup %2589  ;;  %v602_v61 = vmul.f32 %v2588_v52, %v3292_v26  ;;  %2615 = vpow2.f32 %v2109_v23  ;;  %v2118_v33 = vmul.f32 -1.442695, %v184_v12 }
  0x7c   :  { %v2592_v2 = vpop.eup %2591  ;;  %v655_v41 = vpack.c.bf16 %v601_v55, %v600_v51  ;;  %v603_v44 = vmul.f32 %v2590_v60, %v3294_v29  ;;  %2617 = vpow2.f32 %v2110_v45  ;;  %v186_v29 = vmul.f32 %v3224_v6, %v3411_v1 }
  0x7d   :  { %v2594_v22 = vpop.eup %2593  ;;  %v604_v26 = vmul.f32 %v2592_v2, %v3298_v36  ;;  %2619 = vpow2.f32 %v2111_v30  ;;  %v187_v36 = vmul.f32 %v3224_v6, %v3414_v3  ;;  %v189_v30 = vmul.f32 %v3224_v6, %v3424_v27 }
  0x7e   :  { %v2596_v25 = vpop.eup %2595  ;;  %2334 = vmatprep.mubr.bf16.mxu0 %v655_v41  ;;  %v656_v4 = vpack.c.bf16 %v603_v44, %v602_v61  ;;  %v605_v23 = vmul.f32 %v2594_v22, %v3300_v38  ;;  %2621 = vpow2.f32 %v2112_v34  ;;  %v2120_v51 = vmul.f32 -1.442695, %v186_v29 }
  0x7f   :  { %v2598_v32 = vpop.eup %2597  ;;  %2623 = vpow2.f32 %v2113_v14  ;;  %v606_v42 = vmul.f32 %v2596_v25, %v3304_v43  ;;  %v190_v43 = vmul.f32 %v3224_v6, %v3430_v5 }
  0x80   :  { %v2600_v40 = vpop.eup %2599  ;;  %2335 = vmatmul.mubr.bf16.gmra.mxu0 %v656_v4  ;;  %v657_v38 = vpack.c.bf16 %v605_v23, %v604_v26  ;;  %v607_v45 = vmul.f32 %v2598_v32, %v3308_v49  ;;  %2625 = vpow2.f32 %v2114_v56  ;;  %v2121_v49 = vmul.f32 -1.442695, %v187_v36 }
  0x81   :  { %v2602_v9 = vpop.eup %2601  ;;  %v608_v46 = vmul.f32 %v2600_v40, %v3314_v54  ;;  %2627 = vpow2.f32 %v2115_v62  ;;  %v2122_v54 = vmul.f32 -1.442695, %v188_v35  ;;  %v2123_v56 = vmul.f32 -1.442695, %v189_v30 }
  0x82   :  { %v2604_v31 = vpop.eup %2603  ;;  %2338 = vmatprep.mubr.bf16.mxu0 %v657_v38  ;;  %v609_v50 = vmul.f32 %v2602_v9, %v3318_v59  ;;  %2629 = vpow2.f32 %v2116_v20  ;;  %v658_v52 = vpack.c.bf16 %v607_v45, %v606_v42  ;;  %v2124_v61 = vmul.f32 -1.442695, %v190_v43  ;;  %v3448_v9 = vld [vmem:[#allocation2 + $0x188] sm:$0xff]  ;;  %v3454_v43 = vld [vmem:[#allocation2 + $0x198] sm:$0xff] }
  0x83   :  { %v2606_v34 = vpop.eup %2605  ;;  %2631 = vpow2.f32 %v2117_v15  ;;  %v610_v12 = vmul.f32 %v2604_v31, %v3322_v0  ;;  %v3452_v31 = vld [vmem:[#allocation2 + $0x190] sm:$0xff] }
  0x84   :  { %v2608_v11 = vpop.eup %2607  ;;  %2633 = vpow2.f32 %v2118_v33  ;;  %v659_v14 = vpack.c.bf16 %v609_v50, %v608_v46  ;;  %v611_v2 = vmul.f32 %v2606_v34, %v3327_v8  ;;  %v192_v34 = vmul.f32 %v3224_v6, %v3448_v9 }
  0x85   :  { %v2610_v55 = vpop.eup %2609  ;;  %2635 = vpow2.f32 %v2119_v47  ;;  %v612_v44 = vmul.f32 %v2608_v11, %v3330_v21  ;;  %v3460_v11 = vld [vmem:[#allocation2 + $0x1a8] sm:$0xff] }
  0x86   :  { %v2612_v60 = vpop.eup %2611  ;;  %2637 = vpow2.f32 %v2120_v51  ;;  %v613_v20 = vmul.f32 %v2610_v55, %v3332_v24  ;;  %v660_v23 = vpack.c.bf16 %v611_v2, %v610_v12  ;;  %v3444_v24 = vld [vmem:[#allocation2 + $0x180] sm:$0xff]  ;;  %v3468_v12 = vld [vmem:[#allocation2 + $0x1b8] sm:$0xff] }
  0x87   :  { %v2614_v59 = vpop.eup %2613  ;;  %2639 = vpow2.f32 %v2121_v49  ;;  %v614_v38 = vmul.f32 %v2612_v60, %v3344_v10  ;;  %v191_v30 = vmul.f32 %v3224_v6, %v3444_v24  ;;  %v3458_v49 = vld [vmem:[#allocation2 + $0x1a0] sm:$0xff] }
  0x88   :  { %v2616_v62 = vpop.eup %2615  ;;  %2339 = vmatmul.mubr.bf16.gmra.mxu0 %v658_v52  ;;  %2641 = vpow2.f32 %v2122_v54  ;;  %v661_v29 = vpack.c.bf16 %v613_v20, %v612_v44  ;;  %v615_v42 = vmul.f32 %v2614_v59, %v3350_v53  ;;  %v195_v44 = vmul.f32 %v3224_v6, %v3458_v49 }
  0x89   :  { %v2618_v41 = vpop.eup %2617  ;;  %2342 = vmatprep.mubr.bf16.mxu0 %v659_v14  ;;  %v427_v22 = vadd.f32 1.0, %v2616_v62  ;;  %2643 = vpow2.f32 %v2123_v56  ;;  %v193_v14 = vmul.f32 %v3224_v6, %v3452_v31  ;;  %v3464_v56 = vld [vmem:[#allocation2 + $0x1b0] sm:$0xff]  ;;  %v2125_v59 = vmul.f32 -1.442695, %v191_v30 }
  0x8a   :  { %v2620_v26 = vpop.eup %2619  ;;  %v428_v15 = vadd.f32 1.0, %v2618_v41  ;;  %2645 = vpow2.f32 %v2124_v61  ;;  %v662_v54 = vpack.c.bf16 %v615_v42, %v614_v38  ;;  %v194_v62 = vmul.f32 %v3224_v6, %v3454_v43 }
  0x8b   :  { %v2622_v18 = vpop.eup %2621  ;;  %2647 = vrcp.f32 %v427_v22  ;;  %v429_v25 = vadd.f32 1.0, %v2620_v26  ;;  %v196_v20 = vmul.f32 %v3224_v6, %v3460_v11  ;;  %v3474_v22 = vld [vmem:[#allocation2 + $0x1c0] sm:$0xff]  ;;  %v2129_v38 = vmul.f32 -1.442695, %v195_v44 }
  0x8c   :  { %v2624_v4 = vpop.eup %2623  ;;  %2649 = vrcp.f32 %v428_v15  ;;  %v430_v0 = vadd.f32 1.0, %v2622_v18  ;;  %v2126_v18 = vmul.f32 -1.442695, %v192_v34  ;;  %v3494_v34 = vld [vmem:[#allocation2 + $0x1e0] sm:$0xff] }
  0x8d   :  { %v2626_v8 = vpop.eup %2625  ;;  %2651 = vrcp.f32 %v429_v25  ;;  %v431_v32 = vadd.f32 1.0, %v2624_v4  ;;  %v197_v25 = vmul.f32 %v3224_v6, %v3464_v56  ;;  %v2130_v42 = vmul.f32 -1.442695, %v196_v20  ;;  %v3505_v20 = vld [vmem:[#allocation2 + $0x1f0] sm:$0xff] }
  0x8e   :  { %v2628_v33 = vpop.eup %2627  ;;  %2653 = vrcp.f32 %v430_v0  ;;  %v432_v21 = vadd.f32 1.0, %v2626_v8  ;;  %v2127_v0 = vmul.f32 -1.442695, %v193_v14  ;;  %v198_v8 = vmul.f32 %v3224_v6, %v3468_v12 }
  0x8f   :  { %v2630_v36 = vpop.eup %2629  ;;  %2655 = vrcp.f32 %v431_v32  ;;  %v433_v35 = vadd.f32 1.0, %v2628_v33  ;;  %v2131_v30 = vmul.f32 -1.442695, %v197_v25 }
  0x90   :  { %v2632_v40 = vpop.eup %2631  ;;  %2343 = vmatmul.mubr.bf16.gmra.mxu0 %v660_v23  ;;  %2657 = vrcp.f32 %v432_v21  ;;  %v434_v45 = vadd.f32 1.0, %v2630_v36  ;;  %v2128_v21 = vmul.f32 -1.442695, %v194_v62  ;;  %v199_v36 = vmul.f32 %v3224_v6, %v3474_v22 }
  0x91   :  { %v2634_v46 = vpop.eup %2633  ;;  %2346 = vmatprep.mubr.bf16.mxu0 %v661_v29  ;;  %2659 = vrcp.f32 %v433_v35  ;;  %v435_v47 = vadd.f32 1.0, %v2632_v40  ;;  %v3480_v29 = vld [vmem:[#allocation2 + $0x1c8] sm:$0xff] }
  0x92   :  { %v2636_v50 = vpop.eup %2635  ;;  %2661 = vrcp.f32 %v434_v45  ;;  %v436_v51 = vadd.f32 1.0, %v2634_v46  ;;  %v3486_v45 = vld [vmem:[#allocation2 + $0x1d0] sm:$0xff] }
  0x93   :  { %v2638_v10 = vpop.eup %2637  ;;  %2663 = vrcp.f32 %v435_v47  ;;  %v437_v53 = vadd.f32 1.0, %v2636_v50  ;;  %v3491_v50 = vld [vmem:[#allocation2 + $0x1d8] sm:$0xff]  ;;  %v201_v14 = vmul.f32 %v3224_v6, %v3486_v45 }
  0x94   :  { %v2640_v52 = vpop.eup %2639  ;;  %2665 = vrcp.f32 %v436_v51  ;;  %v438_v55 = vadd.f32 1.0, %v2638_v10 }
  0x95   :  { %v2642_v60 = vpop.eup %2641  ;;  %2667 = vrcp.f32 %v437_v53  ;;  %v439_v61 = vadd.f32 1.0, %v2640_v52  ;;  %v3496_v52 = vld [vmem:[#allocation2 + $0x1e8] sm:$0xff] }
  0x96   :  { %v2644_v2 = vpop.eup %2643  ;;  %2669 = vrcp.f32 %v438_v55  ;;  %v440_v41 = vadd.f32 1.0, %v2642_v60  ;;  %v2133_v55 = vmul.f32 -1.442695, %v199_v36 }
  0x97   :  { %v2646_v26 = vpop.eup %2645  ;;  %2671 = vrcp.f32 %v439_v61  ;;  %v441_v15 = vadd.f32 1.0, %v2644_v2 }
  0x98   :  { %v2648_v4 = vpop.eup %2647  ;;  %2347 = vmatmul.mubr.bf16.gmra.mxu0 %v662_v54  ;;  %2673 = vrcp.f32 %v440_v41  ;;  %v442_v23 = vadd.f32 1.0, %v2646_v26 }
  0x99   :  { %v2650_v32 = vpop.eup %2649  ;;  %v616_v33 = vmul.f32 %v2648_v4, %v3364_v37  ;;  %2675 = vrcp.f32 %v441_v15  ;;  %v200_v37 = vmul.f32 %v3224_v6, %v3480_v29  ;;  %v2135_v4 = vmul.f32 -1.442695, %v201_v14 }
  0x9a   :  { %v2652_v35 = vpop.eup %2651  ;;  %v617_v40 = vmul.f32 %v2650_v32, %v3368_v58  ;;  %2677 = vrcp.f32 %v442_v23  ;;  %v2132_v58 = vmul.f32 -1.442695, %v198_v8 }
  0x9b   :  { %v2654_v46 = vpop.eup %2653  ;;  %v618_v47 = vmul.f32 %v2652_v35, %v3372_v63  ;;  %2679 = vpow2.f32 %v2125_v59  ;;  %v2134_v41 = vmul.f32 -1.442695, %v200_v37 }
  0x9c   :  { %v2656_v51 = vpop.eup %2655  ;;  %v663_v10 = vpack.c.bf16 %v617_v40, %v616_v33  ;;  %v619_v53 = vmul.f32 %v2654_v46, %v3374_v16  ;;  %2681 = vpow2.f32 %v2126_v18  ;;  %v2991_v16 = vld [vmem:[#allocation8 + $0x1] ss:$0 sm:$0xff] }
  0x9d   :  { %v2658_v54 = vpop.eup %2657  ;;  %v620_v63 = vmul.f32 %v2656_v51, %v3378_v17  ;;  %2683 = vpow2.f32 %v2127_v0  ;;  %v202_v62 = vmul.f32 %v2991_v16, %v3491_v50  ;;  %v203_v44 = vmul.f32 %v2991_v16, %v3494_v34 }
  0x9e   :  { %v2660_v60 = vpop.eup %2659  ;;  %2350 = vmatprep.mubr.bf16.mxu0 %v663_v10  ;;  %v664_v61 = vpack.c.bf16 %v619_v53, %v618_v47  ;;  %v621_v59 = vmul.f32 %v2658_v54, %v3380_v7  ;;  %2685 = vpow2.f32 %v2128_v21  ;;  %v204_v17 = vmul.f32 %v2991_v16, %v3496_v52 }
  0x9f   :  { %v2662_v2 = vpop.eup %2661  ;;  %2687 = vpow2.f32 %v2129_v38  ;;  %v622_v15 = vmul.f32 %v2660_v60, %v3384_v19  ;;  %v2136_v8 = vmul.f32 -1.442695, %v202_v62  ;;  %v205_v32 = vmul.f32 %v2991_v16, %v3505_v20  ;;  %v2479_v62 = vld [vmem:[#allocation7 + $0x38] sm:$0xff]  }
  0xa0   :  { %v2664_v26 = vpop.eup %2663  ;;  %2351 = vmatmul.mubr.bf16.gmra.mxu0 %v664_v61  ;;  %v665_v6 = vpack.c.bf16 %v621_v59, %v620_v63  ;;  %v623_v7 = vmul.f32 %v2662_v2, %v3388_v28  ;;  %2689 = vpow2.f32 %v2130_v42  ;;  %v2137_v21 = vmul.f32 -1.442695, %v203_v44  ;;  %2382 = vmatprep.subr.bf16.mxu1 %v2479_v62 }
  0xa1   :  { %v2666_v18 = vpop.eup %2665  ;;  %v624_v25 = vmul.f32 %v2664_v26, %v3394_v39  ;;  %2691 = vpow2.f32 %v2131_v30  ;;  %v2138_v28 = vmul.f32 -1.442695, %v204_v17  ;;  %v2139_v38 = vmul.f32 -1.442695, %v205_v32  ;;  %2383 = vmatpush3.bf16.msra.mxu1 %v2479_v62  ;;  %v2486_v62 = vld [vmem:[#allocation7] sm:$0xff]  }
  0xa2   :  { %v2668_v23 = vpop.eup %2667  ;;  %2354 = vmatprep.mubr.bf16.mxu0 %v665_v6  ;;  %v625_v0 = vmul.f32 %v2666_v18, %v3400_v48  ;;  %2693 = vpow2.f32 %v2132_v58  ;;  %v666_v36 = vpack.c.bf16 %v623_v7, %v622_v15 }
  0xa3   :  { %v2670_v33 = vpop.eup %2669  ;;  %2695 = vpow2.f32 %v2133_v55  ;;  %v626_v46 = vmul.f32 %v2668_v23, %v3406_v57 }
  0xa4   :  { %v2672_v19 = vpop.eup %2671  ;;  %2697 = vpow2.f32 %v2134_v41  ;;  %v667_v40 = vpack.c.bf16 %v625_v0, %v624_v25  ;;  %v627_v47 = vmul.f32 %v2670_v33, %v3411_v1 }
  0xa5   :  { %v2674_v35 = vpop.eup %2673  ;;  %2699 = vpow2.f32 %v2135_v4  ;;  %v628_v37 = vmul.f32 %v2672_v19, %v3414_v3  ;;  %v2480_v4 = vld [vmem:[#allocation7 + $0x30] sm:$0xff]  }
  0xa6   :  { %v2676_v39 = vpop.eup %2675  ;;  %2701 = vpow2.f32 %v2136_v8  ;;  %v629_v51 = vmul.f32 %v2674_v35, %v3416_v13  ;;  %v668_v14 = vpack.c.bf16 %v627_v47, %v626_v46  ;;  %2384 = vmatprep.subr.bf16.mxu1 %v2480_v4 }
  0xa7   :  { %v2678_v42 = vpop.eup %2677  ;;  %2703 = vpow2.f32 %v2137_v21  ;;  %v630_v41 = vmul.f32 %v2676_v39, %v3424_v27  ;;  %2385 = vmatpush3.bf16.msra.mxu1 %v2480_v4  ;;  %v2481_v21 = vld [vmem:[#allocation7 + $0x28] sm:$0xff]  }
  0xa8   :  { %v2680_v48 = vpop.eup %2679  ;;  %2355 = vmatmul.mubr.bf16.gmra.mxu0 %v666_v36  ;;  %2705 = vpow2.f32 %v2138_v28  ;;  %v669_v1 = vpack.c.bf16 %v629_v51, %v628_v37  ;;  %v631_v44 = vmul.f32 %v2678_v42, %v3430_v5  ;;  %2386 = vmatprep.subr.bf16.mxu1 %v2481_v21  ;;  %v2482_v42 = vld [vmem:[#allocation7 + $0x20] sm:$0xff]  }
  0xa9   :  { %v2682_v30 = vpop.eup %2681  ;;  %2358 = vmatprep.mubr.bf16.mxu0 %v667_v40  ;;  %v443_v10 = vadd.f32 1.0, %v2680_v48  ;;  %2707 = vpow2.f32 %v2139_v38 }
  0xaa   :  { %v2684_v53 = vpop.eup %2683  ;;  %v444_v58 = vadd.f32 1.0, %v2682_v30  ;;  %v670_v0 = vpack.c.bf16 %v631_v44, %v630_v41 }
  0xab   :  { %v2686_v54 = vpop.eup %2685  ;;  %2709 = vrcp.f32 %v443_v10  ;;  %v445_v63 = vadd.f32 1.0, %v2684_v53  ;;  %2387 = vmatpush3.bf16.msra.mxu1 %v2481_v21 }
  0xac   :  { %v2688_v55 = vpop.eup %2687  ;;  %2711 = vrcp.f32 %v444_v58  ;;  %v446_v57 = vadd.f32 1.0, %v2686_v54  ;;  %2388 = vmatprep.subr.bf16.mxu1 %v2482_v42 }
  0xad   :  { %v2690_v60 = vpop.eup %2689  ;;  %2713 = vrcp.f32 %v445_v63  ;;  %v447_v61 = vadd.f32 1.0, %v2688_v55 }
  0xae   :  { %v2692_v59 = vpop.eup %2691  ;;  %2715 = vrcp.f32 %v446_v57  ;;  %v448_v3 = vadd.f32 1.0, %v2690_v60 }
  0xaf   :  { %v2694_v16 = vpop.eup %2693  ;;  %2717 = vrcp.f32 %v447_v61  ;;  %v449_v13 = vadd.f32 1.0, %v2692_v59  ;;  %2389 = vmatpush3.bf16.msra.mxu1 %v2482_v42 }
  0xb0   :  { %v2696_v2 = vpop.eup %2695  ;;  %2359 = vmatmul.mubr.bf16.gmra.mxu0 %v668_v14  ;;  %2719 = vrcp.f32 %v448_v3  ;;  %v450_v17 = vadd.f32 1.0, %v2694_v16 }
  0xb1   :  { %v2698_v26 = vpop.eup %2697  ;;  %2362 = vmatprep.mubr.bf16.mxu0 %v669_v1  ;;  %2721 = vrcp.f32 %v449_v13  ;;  %v451_v6 = vadd.f32 1.0, %v2696_v2  ;;  %v2484_v1 = vld [vmem:[#allocation7 + $0x10] sm:$0xff]  }
  0xb2   :  { %v2700_v15 = vpop.eup %2699  ;;  %2723 = vrcp.f32 %v450_v17  ;;  %v452_v7 = vadd.f32 1.0, %v2698_v26  ;;  %v3535_v17 = vld [vmem:[#allocation8 + $0x3] ss:$0 sm:$0xff] }
  0xb3   :  { %v2702_v18 = vpop.eup %2701  ;;  %2725 = vrcp.f32 %v451_v6  ;;  %v453_v25 = vadd.f32 1.0, %v2700_v15 }
  0xb4   :  { %v2704_v23 = vpop.eup %2703  ;;  %2727 = vrcp.f32 %v452_v7  ;;  %v454_v27 = vadd.f32 1.0, %v2702_v18 }
  0xb5   :  { %v2706_v5 = vpop.eup %2705  ;;  %v455_v8 = vadd.f32 1.0, %v2704_v23  ;;  %2729 = vrcp.f32 %v453_v25 }
  0xb6   :  { %v456_v32 = vadd.f32 1.0, %v2706_v5  ;;  %v2708_v33 = vpop.eup %2707  ;;  %2731 = vrcp.f32 %v454_v27 }
  0xb7   :  { %2733 = vrcp.f32 %v455_v8  ;;  %v457_v30 = vadd.f32 1.0, %v2708_v33 }
  0xb8   :  { %v2710_v19 = vpop.eup %2709  ;;  %2363 = vmatmul.mubr.bf16.gmra.mxu0 %v670_v0  ;;  %2735 = vrcp.f32 %v456_v32 }
  0xb9   :  { %v2712_v36 = vpop.eup %2711  ;;  %v632_v28 = vmul.f32 %v2710_v19, %v3444_v24  ;;  %2737 = vrcp.f32 %v457_v30 }
  0xba   :  { %v2714_v35 = vpop.eup %2713  ;;  %v633_v40 = vmul.f32 %v2712_v36, %v3448_v9 }
  0xbb   :  { %v2716_v39 = vpop.eup %2715  ;;  %v634_v38 = vmul.f32 %v2714_v35, %v3452_v31 }
  0xbc   :  { %v2718_v48 = vpop.eup %2717  ;;  %v671_v46 = vpack.c.bf16 %v633_v40, %v632_v28  ;;  %v635_v47 = vmul.f32 %v2716_v39, %v3454_v43  ;;  %v2483_v43 = vld [vmem:[#allocation7 + $0x18] sm:$0xff]  }
  0xbd   :  { %v2720_v37 = vpop.eup %2719  ;;  %v636_v51 = vmul.f32 %v2718_v48, %v3458_v49  ;;  %2390 = vmatprep.subr.bf16.mxu1 %v2483_v43 }
  0xbe   :  { %v2722_v24 = vpop.eup %2721  ;;  %2366 = vmatprep.mubr.bf16.mxu0 %v671_v46  ;;  %v672_v10 = vpack.c.bf16 %v635_v47, %v634_v38  ;;  %v637_v53 = vmul.f32 %v2720_v37, %v3460_v11  ;;  %2391 = vmatpush3.bf16.msra.mxu1 %v2483_v43 }
  0xbf   :  { %v2724_v9 = vpop.eup %2723  ;;  %v638_v54 = vmul.f32 %v2722_v24, %v3464_v56  ;;  %2392 = vmatprep.subr.bf16.mxu1 %v2484_v1 }
  0xc0   :  { %v2726_v58 = vpop.eup %2725  ;;  %2367 = vmatmul.mubr.bf16.gmra.mxu0 %v672_v10  ;;  %v673_v31 = vpack.c.bf16 %v637_v53, %v636_v51  ;;  %v639_v63 = vmul.f32 %v2724_v9, %v3468_v12 }
  0xc1   :  { %v2728_v55 = vpop.eup %2727  ;;  %v640_v49 = vmul.f32 %v2726_v58, %v3474_v22  ;;  %v2485_v22 = vld [vmem:[#allocation7 + $0x8] sm:$0xff]  }
  0xc2   :  { %2370 = vmatprep.mubr.bf16.mxu0 %v673_v31  ;;  %v641_v14 = vmul.f32 %v2728_v55, %v3480_v29  ;;  %v2730_v57 = vpop.eup %2729  ;;  %v674_v60 = vpack.c.bf16 %v639_v63, %v638_v54  ;;  %2393 = vmatpush3.bf16.msra.mxu1 %v2484_v1 }
  0xc3   :  { %v2732_v11 = vpop.eup %2731  ;;  %v642_v56 = vmul.f32 %v2730_v57, %v3486_v45  ;;  %2394 = vmatprep.subr.bf16.mxu1 %v2485_v22 }
  0xc4   :  { %v2734_v61 = vpop.eup %2733  ;;  %v675_v59 = vpack.c.bf16 %v641_v14, %v640_v49  ;;  %v643_v12 = vmul.f32 %v2732_v11, %v3491_v50  ;;  %v3533_v50 = vld [vmem:[#allocation8] ss:$0 sm:$0xff] }
  0xc5   :  { %v2736_v3 = vpop.eup %2735  ;;  %v644_v29 = vmul.f32 %v2734_v61, %v3494_v34 }
  0xc6   :  { %v645_v16 = vmul.f32 %v2736_v3, %v3496_v52  ;;  %2395 = vmatpush3.bf16.msra.mxu1 %v2485_v22  ;;  %v676_v13 = vpack.c.bf16 %v643_v12, %v642_v56  ;;  %v2738_v2 = vpop.eup %2737 }
  0xc7   :  { %2396 = vmatprep.subr.bf16.mxu1 %v2486_v62  ;;  %v646_v44 = vmul.f32 %v2738_v2, %v3505_v20 }
  0xc8   :  { %2371 = vmatmul.mubr.bf16.gmra.mxu0 %v674_v60  ;;  %v677_v41 = vpack.c.bf16 %v645_v16, %v644_v29 }
  0xc9   :  { %2374 = vmatprep.mubr.bf16.mxu0 %v675_v59  ;;  %v678_v45 = vpack.c.bf16 %v646_v44, %v646_v44 }
  0xca   :  { %2397 = vmatpush3.bf16.msra.mxu1 %v2486_v62 }
  0xd0   :  { %2375 = vmatmul.mubr.bf16.gmra.mxu0 %v676_v13 }
  0xd1   :  { %2378 = vmatprep.mubr.bf16.mxu0 %v677_v41 }
  0xd8   :  { %2379 = vmatmul.mubr.bf16.gmra.mxu0 %v678_v45 }
 0x120   :  { %v2320_v34 = vpop.f32.mrf.mxu0 }
 0x121   :  { %v3538_v52 = vadd.f32 %v2320_v34, %v3533_v50 }
 0x122   :  { %v781_v26 = vpop.f32.mrf.mxu0 }
 0x123   :  { %v1041_v6 = vmul.f32 %v3535_v17, %v3538_v52  ;;  %v3543_v15 = vadd.f32 %v3533_v50, %v781_v26 }
 0x124   :  { %v2321_v7 = vpop.f32.mrf.mxu0 }
 0x125   :  { %v2152_v20 = vmul.f32 -1.442695, %v1041_v6  ;;  %v1039_v18 = vmul.f32 %v3535_v17, %v3543_v15  ;;  %v3548_v25 = vadd.f32 %v2321_v7, %v3533_v50 }
 0x126   :  { %v784_v4 = vpop.f32.mrf.mxu0 }
 0x127   :  { %2739 = vpow2.f32 %v2152_v20  ;;  %v2150_v23 = vmul.f32 -1.442695, %v1039_v18  ;;  %v1042_v0 = vmul.f32 %v3535_v17, %v3548_v25  ;;  %v3553_v27 = vadd.f32 %v3533_v50, %v784_v4 }
 0x128   :  { %v2324_v5 = vpop.f32.mrf.mxu0 }
 0x129   :  { %2741 = vpow2.f32 %v2150_v23  ;;  %v2153_v8 = vmul.f32 -1.442695, %v1042_v0  ;;  %v1040_v32 = vmul.f32 %v3535_v17, %v3553_v27  ;;  %v3558_v33 = vadd.f32 %v2324_v5, %v3533_v50 }
 0x12a   :  { %v797_v21 = vpop.f32.mrf.mxu0 }
 0x12b   :  { %2743 = vpow2.f32 %v2153_v8  ;;  %v2151_v19 = vmul.f32 -1.442695, %v1040_v32  ;;  %v1045_v36 = vmul.f32 %v3535_v17, %v3558_v33  ;;  %v3563_v28 = vadd.f32 %v3533_v50, %v797_v21 }
 0x12c   :  { %v2325_v35 = vpop.f32.mrf.mxu0 }
 0x12d   :  { %2745 = vpow2.f32 %v2151_v19  ;;  %v2156_v40 = vmul.f32 -1.442695, %v1045_v36  ;;  %v1043_v39 = vmul.f32 %v3535_v17, %v3563_v28  ;;  %v3568_v38 = vadd.f32 %v2325_v35, %v3533_v50 }
 0x12e   :  { %v800_v42 = vpop.f32.mrf.mxu0 }
 0x12f   :  { %2747 = vpow2.f32 %v2156_v40  ;;  %v2154_v48 = vmul.f32 -1.442695, %v1043_v39  ;;  %v1046_v46 = vmul.f32 %v3535_v17, %v3568_v38  ;;  %v3573_v47 = vadd.f32 %v3533_v50, %v800_v42 }
 0x130   :  { %v2328_v30 = vpop.f32.mrf.mxu0 }
 0x131   :  { %2749 = vpow2.f32 %v2154_v48  ;;  %v2157_v37 = vmul.f32 -1.442695, %v1046_v46  ;;  %v1044_v51 = vmul.f32 %v3535_v17, %v3573_v47  ;;  %v3578_v24 = vadd.f32 %v2328_v30, %v3533_v50 }
 0x132   :  { %v813_v10 = vpop.f32.mrf.mxu0 }
 0x133   :  { %2751 = vpow2.f32 %v2157_v37  ;;  %v2155_v53 = vmul.f32 -1.442695, %v1044_v51  ;;  %v1049_v9 = vmul.f32 %v3535_v17, %v3578_v24  ;;  %v3583_v58 = vadd.f32 %v3533_v50, %v813_v10 }
 0x134   :  { %v2740_v31 = vpop.eup %2739  ;;  %v2329_v54 = vpop.f32.mrf.mxu0 }
 0x135   :  { %v1293_v63 = vadd.f32 1.0, %v2740_v31  ;;  %2753 = vpow2.f32 %v2155_v53  ;;  %v2160_v43 = vmul.f32 -1.442695, %v1049_v9  ;;  %v1047_v55 = vmul.f32 %v3535_v17, %v3583_v58 }
 0x136   :  { %v2742_v49 = vpop.eup %2741  ;;  %v3588_v14 = vadd.f32 %v2329_v54, %v3533_v50  ;;  %v816_v57 = vpop.f32.mrf.mxu0 }
 0x137   :  { %2755 = vrcp.f32 %v1293_v63  ;;  %v1291_v11 = vadd.f32 1.0, %v2742_v49  ;;  %v2158_v60 = vmul.f32 -1.442695, %v1047_v55  ;;  %v3591_v1 = vadd.f32 %v3533_v50, %v816_v57 }
 0x138   :  { %v2744_v61 = vpop.eup %2743  ;;  %2757 = vpow2.f32 %v2160_v43  ;;  %v1050_v59 = vmul.f32 %v3535_v17, %v3588_v14  ;;  %v2332_v3 = vpop.f32.mrf.mxu0 }
 0x139   :  { %2759 = vrcp.f32 %v1291_v11  ;;  %v1294_v56 = vadd.f32 1.0, %v2744_v61  ;;  %v1048_v12 = vmul.f32 %v3535_v17, %v3591_v1  ;;  %v3598_v22 = vadd.f32 %v2332_v3, %v3533_v50 }
 0x13a   :  { %v2746_v29 = vpop.eup %2745  ;;  %2761 = vpow2.f32 %v2158_v60  ;;  %v2161_v16 = vmul.f32 -1.442695, %v1050_v59  ;;  %v829_v13 = vpop.f32.mrf.mxu0 }
 0x13b   :  { %2763 = vrcp.f32 %v1294_v56  ;;  %v1292_v62 = vadd.f32 1.0, %v2746_v29  ;;  %v2159_v2 = vmul.f32 -1.442695, %v1048_v12  ;;  %v1053_v41 = vmul.f32 %v3535_v17, %v3598_v22 }
 0x13c   :  { %v2748_v44 = vpop.eup %2747  ;;  %2765 = vpow2.f32 %v2161_v16  ;;  %v3603_v45 = vadd.f32 %v3533_v50, %v829_v13  ;;  %v2333_v34 = vpop.f32.mrf.mxu0 }
 0x13d   :  { %2767 = vrcp.f32 %v1292_v62  ;;  %v1297_v26 = vadd.f32 1.0, %v2748_v44  ;;  %v2164_v6 = vmul.f32 -1.442695, %v1053_v41  ;;  %v3606_v7 = vadd.f32 %v2333_v34, %v3533_v50 }
 0x13e   :  { %v2750_v20 = vpop.eup %2749  ;;  %2769 = vpow2.f32 %v2159_v2  ;;  %v1051_v18 = vmul.f32 %v3535_v17, %v3603_v45  ;;  %v832_v4 = vpop.f32.mrf.mxu0 }
 0x13f   :  { %2771 = vrcp.f32 %v1297_v26  ;;  %v1295_v23 = vadd.f32 1.0, %v2750_v20  ;;  %v1054_v0 = vmul.f32 %v3535_v17, %v3606_v7  ;;  %v3613_v5 = vadd.f32 %v3533_v50, %v832_v4 }
 0x140   :  { %v2752_v8 = vpop.eup %2751  ;;  %2773 = vpow2.f32 %v2164_v6  ;;  %v2162_v32 = vmul.f32 -1.442695, %v1051_v18  ;;  %v2336_v21 = vpop.f32.mrf.mxu0 }
 0x141   :  { %2775 = vrcp.f32 %v1295_v23  ;;  %v1298_v19 = vadd.f32 1.0, %v2752_v8  ;;  %v2165_v36 = vmul.f32 -1.442695, %v1054_v0  ;;  %v1052_v35 = vmul.f32 %v3535_v17, %v3613_v5 }
 0x142   :  { %v2754_v40 = vpop.eup %2753  ;;  %2777 = vpow2.f32 %v2162_v32  ;;  %v3618_v39 = vadd.f32 %v2336_v21, %v3533_v50  ;;  %v845_v42 = vpop.f32.mrf.mxu0 }
 0x143   :  { %2779 = vrcp.f32 %v1298_v19  ;;  %v1296_v48 = vadd.f32 1.0, %v2754_v40  ;;  %v2163_v46 = vmul.f32 -1.442695, %v1052_v35  ;;  %v3621_v30 = vadd.f32 %v3533_v50, %v845_v42 }
 0x144   :  { %v2756_v37 = vpop.eup %2755  ;;  %2781 = vpow2.f32 %v2165_v36  ;;  %v1057_v51 = vmul.f32 %v3535_v17, %v3618_v39  ;;  %v2337_v10 = vpop.f32.mrf.mxu0 }
 0x145   :  { %v2758_v53 = vpop.eup %2757  ;;  %2783 = vrcp.f32 %v1296_v48  ;;  %v1055_v9 = vmul.f32 %v3535_v17, %v3621_v30  ;;  %v3628_v31 = vadd.f32 %v2337_v10, %v3533_v50  ;;  %v1482_v8 = vmul.f32 %v2756_v37, %v3538_v52 }
 0x146   :  { %v2760_v54 = vpop.eup %2759  ;;  %v1301_v63 = vadd.f32 1.0, %v2758_v53  ;;  %2785 = vpow2.f32 %v2163_v46  ;;  %v2168_v43 = vmul.f32 -1.442695, %v1057_v51  ;;  %v848_v55 = vpop.f32.mrf.mxu0 }
 0x147   :  { %v2762_v49 = vpop.eup %2761  ;;  %v2166_v57 = vmul.f32 -1.442695, %v1055_v9  ;;  %v1058_v11 = vmul.f32 %v3535_v17, %v3628_v31  ;;  %v3633_v60 = vadd.f32 %v3533_v50, %v848_v55  ;;  %v1480_v23 = vmul.f32 %v2760_v54, %v3543_v15 }
 0x148   :  { %v2764_v61 = vpop.eup %2763  ;;  %2787 = vrcp.f32 %v1301_v63  ;;  %v1299_v59 = vadd.f32 1.0, %v2762_v49  ;;  %v2340_v3 = vpop.f32.mrf.mxu0 }
 0x149   :  { %v2766_v56 = vpop.eup %2765  ;;  %2789 = vpow2.f32 %v2168_v43  ;;  %v2169_v12 = vmul.f32 -1.442695, %v1058_v11  ;;  %v1056_v29 = vmul.f32 %v3535_v17, %v3633_v60  ;;  %v1483_v13 = vmul.f32 %v2764_v61, %v3548_v25 }
 0x14a   :  { %v2768_v16 = vpop.eup %2767  ;;  %2791 = vrcp.f32 %v1299_v59  ;;  %v1302_v62 = vadd.f32 1.0, %v2766_v56  ;;  %v3639_v2 = vadd.f32 %v2340_v3, %v3533_v50  ;;  %v861_v41 = vpop.f32.mrf.mxu0 }
 0x14b   :  { %v2770_v44 = vpop.eup %2769  ;;  %2793 = vpow2.f32 %v2166_v57  ;;  %v2167_v34 = vmul.f32 -1.442695, %v1056_v29  ;;  %v3642_v26 = vadd.f32 %v3533_v50, %v861_v41  ;;  %v1481_v6 = vmul.f32 %v2768_v16, %v3553_v27 }
 0x14c   :  { %v2772_v20 = vpop.eup %2771  ;;  %2795 = vrcp.f32 %v1302_v62  ;;  %v1300_v18 = vadd.f32 1.0, %v2770_v44  ;;  %v1061_v25 = vmul.f32 %v3535_v17, %v3639_v2  ;;  %v2341_v4 = vpop.f32.mrf.mxu0  ;;  %v1544_v52 = vpack.c.bf16 %v1483_v13, %v1482_v8 }
 0x14d   :  { %v2774_v0 = vpop.eup %2773  ;;  %2797 = vpow2.f32 %v2169_v12  ;;  %v1059_v32 = vmul.f32 %v3535_v17, %v3642_v26  ;;  %v3652_v21 = vadd.f32 %v2341_v4, %v3533_v50  ;;  %v1543_v40 = vpack.c.bf16 %v1481_v6, %v1480_v23 }
 0x14e   :  { %v2776_v27 = vpop.eup %2775  ;;  %2799 = vrcp.f32 %v1300_v18  ;;  %v1305_v19 = vadd.f32 1.0, %v2774_v0  ;;  %v2172_v36 = vmul.f32 -1.442695, %v1061_v25  ;;  %v864_v35 = vpop.f32.mrf.mxu0  ;;  %v1486_v9 = vmul.f32 %v2772_v20, %v3558_v33 }
 0x14f   :  { %v2778_v42 = vpop.eup %2777  ;;  %2801 = vpow2.f32 %v2167_v34  ;;  %v2170_v48 = vmul.f32 -1.442695, %v1059_v32  ;;  %v1062_v15 = vmul.f32 %v3535_v17, %v3652_v21  ;;  %v3657_v51 = vadd.f32 %v3533_v50, %v864_v35  ;;  %2398 = vmatprep.mubr.bf16.mxu1 %v1543_v40 }
 0x150   :  { %v2780_v46 = vpop.eup %2779  ;;  %2803 = vrcp.f32 %v1305_v19  ;;  %v1303_v37 = vadd.f32 1.0, %v2778_v42  ;;  %v2344_v10 = vpop.f32.mrf.mxu0  ;;  %2399 = vmatmul.mubr.bf16.vlgmr.msra.gmra.mxu1 %v1544_v52  ;;  %v1484_v56 = vmul.f32 %v2776_v27, %v3563_v28 }
 0x151   :  { %v2782_v53 = vpop.eup %2781  ;;  %2805 = vpow2.f32 %v2172_v36  ;;  %v2173_v54 = vmul.f32 -1.442695, %v1062_v15  ;;  %v3661_v63 = vadd.f32 %v2344_v10, %v3533_v50  ;;  %v1487_v55 = vmul.f32 %v2780_v46, %v3568_v38 }
 0x152   :  { %v2784_v43 = vpop.eup %2783  ;;  %2807 = vrcp.f32 %v1303_v37  ;;  %v1306_v49 = vadd.f32 1.0, %v2782_v53  ;;  %v1060_v57 = vmul.f32 %v3535_v17, %v3657_v51  ;;  %v877_v11 = vpop.f32.mrf.mxu0 }
 0x153   :  { %v2786_v61 = vpop.eup %2785  ;;  %v1485_v59 = vmul.f32 %v2784_v43, %v3573_v47  ;;  %2809 = vpow2.f32 %v2170_v48  ;;  %v1065_v33 = vmul.f32 %v3535_v17, %v3661_v63  ;;  %v3670_v3 = vadd.f32 %v3533_v50, %v877_v11 }
 0x154   :  { %2811 = vrcp.f32 %v1306_v49  ;;  %v1304_v38 = vadd.f32 1.0, %v2786_v61  ;;  %v2171_v12 = vmul.f32 -1.442695, %v1060_v57  ;;  %v2345_v29 = vpop.f32.mrf.mxu0  ;;  %v1546_v6 = vpack.c.bf16 %v1487_v55, %v1486_v9 }
 0x155   :  { %v2788_v16 = vpop.eup %2787  ;;  %2813 = vpow2.f32 %v2173_v54  ;;  %v2176_v13 = vmul.f32 -1.442695, %v1065_v33  ;;  %v1063_v62 = vmul.f32 %v3535_v17, %v3670_v3  ;;  %v3676_v47 = vadd.f32 %v2345_v29, %v3533_v50 }
 0x156   :  { %v2790_v41 = vpop.eup %2789  ;;  %2815 = vrcp.f32 %v1304_v38  ;;  %v880_v44 = vpop.f32.mrf.mxu0  ;;  %v1545_v34 = vpack.c.bf16 %v1485_v59, %v1484_v56  ;;  %v1490_v35 = vmul.f32 %v2788_v16, %v3578_v24 }
 0x157   :  { %v2792_v20 = vpop.eup %2791  ;;  %v1309_v28 = vadd.f32 1.0, %v2790_v41  ;;  %2817 = vpow2.f32 %v2171_v12  ;;  %v2174_v18 = vmul.f32 -1.442695, %v1063_v62  ;;  %v1066_v25 = vmul.f32 %v3535_v17, %v3676_v47 }
 0x158   :  { %v2794_v4 = vpop.eup %2793  ;;  %2819 = vpow2.f32 %v2176_v13  ;;  %v3681_v23 = vadd.f32 %v3533_v50, %v880_v44  ;;  %2402 = vmatprep.mubr.bf16.mxu1 %v1545_v34  ;;  %v2348_v0 = vpop.f32.mrf.mxu0  ;;  %v1488_v53 = vmul.f32 %v2792_v20, %v3583_v58 }
 0x159   :  { %v2796_v8 = vpop.eup %2795  ;;  %2821 = vrcp.f32 %v1309_v28  ;;  %v1307_v32 = vadd.f32 1.0, %v2794_v4  ;;  %v2177_v27 = vmul.f32 -1.442695, %v1066_v25  ;;  %v3684_v19 = vadd.f32 %v2348_v0, %v3533_v50  ;;  %2403 = vmatmul.mubr.bf16.gmra.mxu1 %v1546_v6 }
 0x15a   :  { %v2798_v36 = vpop.eup %2797  ;;  %v1491_v40 = vmul.f32 %v2796_v8, %v3588_v14  ;;  %2823 = vpow2.f32 %v2174_v18  ;;  %v1064_v42 = vmul.f32 %v3535_v17, %v3681_v23  ;;  %v893_v48 = vpop.f32.mrf.mxu0 }
 0x15b   :  { %v2800_v15 = vpop.eup %2799  ;;  %2825 = vrcp.f32 %v1307_v32  ;;  %v1310_v52 = vadd.f32 1.0, %v2798_v36  ;;  %v1069_v46 = vmul.f32 %v3535_v17, %v3684_v19  ;;  %v3693_v37 = vadd.f32 %v3533_v50, %v893_v48 }
 0x15c   :  { %v2802_v10 = vpop.eup %2801  ;;  %v1489_v24 = vmul.f32 %v2800_v15, %v3591_v1  ;;  %2827 = vpow2.f32 %v2177_v27  ;;  %v2175_v14 = vmul.f32 -1.442695, %v1064_v42  ;;  %v2349_v9 = vpop.f32.mrf.mxu0  ;;  %v1548_v58 = vpack.c.bf16 %v1491_v40, %v1490_v35 }
 0x15d   :  { %v2804_v54 = vpop.eup %2803  ;;  %2829 = vrcp.f32 %v1310_v52  ;;  %v1308_v43 = vadd.f32 1.0, %v2802_v10  ;;  %v2180_v55 = vmul.f32 -1.442695, %v1069_v46  ;;  %v1067_v49 = vmul.f32 %v3535_v17, %v3693_v37 }
 0x15e   :  { %v2806_v57 = vpop.eup %2805  ;;  %2831 = vpow2.f32 %v2175_v14  ;;  %v3700_v11 = vadd.f32 %v2349_v9, %v3533_v50  ;;  %v896_v61 = vpop.f32.mrf.mxu0  ;;  %v1547_v59 = vpack.c.bf16 %v1489_v24, %v1488_v53  ;;  %v1494_v6 = vmul.f32 %v2804_v54, %v3598_v22 }
 0x15f   :  { %v2808_v33 = vpop.eup %2807  ;;  %2833 = vrcp.f32 %v1308_v43  ;;  %v1313_v1 = vadd.f32 1.0, %v2806_v57  ;;  %v2178_v56 = vmul.f32 -1.442695, %v1067_v49  ;;  %v3703_v38 = vadd.f32 %v3533_v50, %v896_v61 }
 0x160   :  { %v2810_v12 = vpop.eup %2809  ;;  %2835 = vpow2.f32 %v2180_v55  ;;  %v1070_v29 = vmul.f32 %v3535_v17, %v3700_v11  ;;  %2406 = vmatprep.mubr.bf16.mxu1 %v1547_v59  ;;  %v2352_v16 = vpop.f32.mrf.mxu0  ;;  %v1492_v27 = vmul.f32 %v2808_v33, %v3603_v45 }
 0x161   :  { %v2812_v13 = vpop.eup %2811  ;;  %2837 = vrcp.f32 %v1313_v1  ;;  %v1311_v62 = vadd.f32 1.0, %v2810_v12  ;;  %v1068_v41 = vmul.f32 %v3535_v17, %v3703_v38  ;;  %v3710_v44 = vadd.f32 %v2352_v16, %v3533_v50  ;;  %2407 = vmatmul.mubr.bf16.gmra.mxu1 %v1548_v58 }
 0x162   :  { %v2814_v34 = vpop.eup %2813  ;;  %v1495_v20 = vmul.f32 %v2812_v13, %v3606_v7  ;;  %2839 = vpow2.f32 %v2178_v56  ;;  %v2181_v28 = vmul.f32 -1.442695, %v1070_v29  ;;  %v909_v18 = vpop.f32.mrf.mxu0 }
 0x163   :  { %v2816_v25 = vpop.eup %2815  ;;  %2841 = vrcp.f32 %v1311_v62  ;;  %v1314_v4 = vadd.f32 1.0, %v2814_v34  ;;  %v2179_v0 = vmul.f32 -1.442695, %v1068_v41  ;;  %v1073_v8 = vmul.f32 %v3535_v17, %v3710_v44 }
 0x164   :  { %v2818_v32 = vpop.eup %2817  ;;  %v1493_v36 = vmul.f32 %v2816_v25, %v3613_v5  ;;  %2843 = vpow2.f32 %v2181_v28  ;;  %v3719_v22 = vadd.f32 %v3533_v50, %v909_v18  ;;  %v2353_v7 = vpop.f32.mrf.mxu0  ;;  %v1550_v14 = vpack.c.bf16 %v1495_v20, %v1494_v6 }
 0x165   :  { %v2820_v35 = vpop.eup %2819  ;;  %2845 = vrcp.f32 %v1314_v4  ;;  %v1312_v40 = vadd.f32 1.0, %v2818_v32  ;;  %v2184_v42 = vmul.f32 -1.442695, %v1073_v8  ;;  %v3722_v48 = vadd.f32 %v2353_v7, %v3533_v50 }
 0x166   :  { %v2822_v15 = vpop.eup %2821  ;;  %v1317_v52 = vadd.f32 1.0, %v2820_v35  ;;  %2847 = vpow2.f32 %v2179_v0  ;;  %v1071_v45 = vmul.f32 %v3535_v17, %v3719_v22  ;;  %v912_v46 = vpop.f32.mrf.mxu0  ;;  %v1549_v5 = vpack.c.bf16 %v1493_v36, %v1492_v27 }
 0x167   :  { %v2824_v10 = vpop.eup %2823  ;;  %2849 = vrcp.f32 %v1312_v40  ;;  %v1074_v53 = vmul.f32 %v3535_v17, %v3722_v48  ;;  %v3729_v24 = vadd.f32 %v3533_v50, %v912_v46  ;;  %v1498_v27 = vmul.f32 %v2822_v15, %v3618_v39 }
 0x168   :  { %v2826_v9 = vpop.eup %2825  ;;  %2851 = vrcp.f32 %v1317_v52  ;;  %v1315_v54 = vadd.f32 1.0, %v2824_v10  ;;  %v2182_v43 = vmul.f32 -1.442695, %v1071_v45  ;;  %2410 = vmatprep.mubr.bf16.mxu1 %v1549_v5  ;;  %v2356_v55 = vpop.f32.mrf.mxu0 }
 0x169   :  { %v2828_v49 = vpop.eup %2827  ;;  %2853 = vpow2.f32 %v2184_v42  ;;  %v2185_v57 = vmul.f32 -1.442695, %v1074_v53  ;;  %v1072_v61 = vmul.f32 %v3535_v17, %v3729_v24  ;;  %2411 = vmatmul.mubr.bf16.gmra.mxu1 %v1550_v14  ;;  %v3734_v33 = vadd.f32 %v2356_v55, %v3533_v50 }
 0x16a   :  { %v2830_v59 = vpop.eup %2829  ;;  %2855 = vrcp.f32 %v1315_v54  ;;  %v1318_v58 = vadd.f32 1.0, %v2828_v49  ;;  %v925_v1 = vpop.f32.mrf.mxu0  ;;  %v1496_v4 = vmul.f32 %v2826_v9, %v3621_v30 }
 0x16b   :  { %v2832_v56 = vpop.eup %2831  ;;  %2857 = vpow2.f32 %v2182_v43  ;;  %v2183_v12 = vmul.f32 -1.442695, %v1072_v61  ;;  %v3737_v29 = vadd.f32 %v3533_v50, %v925_v1  ;;  %v1499_v13 = vmul.f32 %v2830_v59, %v3628_v31 }
 0x16c   :  { %v2834_v16 = vpop.eup %2833  ;;  %2859 = vrcp.f32 %v1318_v58  ;;  %v1316_v62 = vadd.f32 1.0, %v2832_v56  ;;  %v1077_v41 = vmul.f32 %v3535_v17, %v3734_v33  ;;  %v2357_v34 = vpop.f32.mrf.mxu0 }
 0x16d   :  { %v2836_v6 = vpop.eup %2835  ;;  %v1497_v20 = vmul.f32 %v2834_v16, %v3633_v60  ;;  %2861 = vpow2.f32 %v2185_v57  ;;  %v1075_v28 = vmul.f32 %v3535_v17, %v3737_v29  ;;  %v3746_v18 = vadd.f32 %v2357_v34, %v3533_v50 }
 0x16e   :  { %v2838_v25 = vpop.eup %2837  ;;  %2863 = vrcp.f32 %v1316_v62  ;;  %v1321_v31 = vadd.f32 1.0, %v2836_v6  ;;  %v2188_v0 = vmul.f32 -1.442695, %v1077_v41  ;;  %v928_v8 = vpop.f32.mrf.mxu0  ;;  %v1552_v39 = vpack.c.bf16 %v1499_v13, %v1498_v27 }
 0x16f   :  { %v2840_v32 = vpop.eup %2839  ;;  %2865 = vpow2.f32 %v2183_v12  ;;  %v2186_v36 = vmul.f32 -1.442695, %v1075_v28  ;;  %v1078_v60 = vmul.f32 %v3535_v17, %v3746_v18  ;;  %v3753_v40 = vadd.f32 %v3533_v50, %v928_v8 }
 0x170   :  { %v2842_v7 = vpop.eup %2841  ;;  %2867 = vrcp.f32 %v1321_v31  ;;  %v1319_v35 = vadd.f32 1.0, %v2840_v32  ;;  %v1551_v42 = vpack.c.bf16 %v1497_v20, %v1496_v4  ;;  %v2360_v30 = vpop.f32.mrf.mxu0  ;;  %v1502_v16 = vmul.f32 %v2838_v25, %v3639_v2 }
 0x171   :  { %v2844_v52 = vpop.eup %2843  ;;  %2869 = vpow2.f32 %v2188_v0  ;;  %v2189_v45 = vmul.f32 -1.442695, %v1078_v60  ;;  %v3756_v46 = vadd.f32 %v2360_v30, %v3533_v50  ;;  %v1076_v10 = vmul.f32 %v3535_v17, %v3753_v40 }
 0x172   :  { %v2846_v15 = vpop.eup %2845  ;;  %2871 = vrcp.f32 %v1319_v35  ;;  %v1322_v5 = vadd.f32 1.0, %v2844_v52  ;;  %2414 = vmatprep.mubr.bf16.mxu1 %v1551_v42  ;;  %v941_v53 = vpop.f32.mrf.mxu0  ;;  %v1500_v13 = vmul.f32 %v2842_v7, %v3642_v26 }
 0x173   :  { %v2848_v14 = vpop.eup %2847  ;;  %2873 = vpow2.f32 %v2186_v36  ;;  %v1081_v9 = vmul.f32 %v3535_v17, %v3756_v46  ;;  %2415 = vmatmul.mubr.bf16.gmra.mxu1 %v1552_v39  ;;  %v3763_v54 = vadd.f32 %v3533_v50, %v941_v53  ;;  %v1503_v55 = vmul.f32 %v2846_v15, %v3652_v21 }
 0x174   :  { %v2850_v43 = vpop.eup %2849  ;;  %2875 = vrcp.f32 %v1322_v5  ;;  %v1320_v49 = vadd.f32 1.0, %v2848_v14  ;;  %v2187_v57 = vmul.f32 -1.442695, %v1076_v10  ;;  %v2361_v61 = vpop.f32.mrf.mxu0 }
 0x175   :  { %v2852_v59 = vpop.eup %2851  ;;  %v1501_v58 = vmul.f32 %v2850_v43, %v3657_v51  ;;  %2877 = vpow2.f32 %v2189_v45  ;;  %v2192_v1 = vmul.f32 -1.442695, %v1081_v9  ;;  %v1079_v56 = vmul.f32 %v3535_v17, %v3763_v54 }
 0x176   :  { %v2854_v12 = vpop.eup %2853  ;;  %2879 = vrcp.f32 %v1320_v49  ;;  %v3772_v21 = vadd.f32 %v2361_v61, %v3533_v50  ;;  %v944_v62 = vpop.f32.mrf.mxu0  ;;  %v1554_v26 = vpack.c.bf16 %v1503_v55, %v1502_v16  ;;  %v1506_v43 = vmul.f32 %v2852_v59, %v3661_v63 }
 0x177   :  { %v2856_v41 = vpop.eup %2855  ;;  %v1325_v34 = vadd.f32 1.0, %v2854_v12  ;;  %2881 = vpow2.f32 %v2187_v57  ;;  %v2190_v6 = vmul.f32 -1.442695, %v1079_v56  ;;  %v3775_v51 = vadd.f32 %v3533_v50, %v944_v62 }
 0x178   :  { %v2858_v20 = vpop.eup %2857  ;;  %2883 = vpow2.f32 %v2192_v1  ;;  %v1082_v28 = vmul.f32 %v3535_v17, %v3772_v21  ;;  %v1553_v2 = vpack.c.bf16 %v1501_v58, %v1500_v13  ;;  %v2364_v25 = vpop.f32.mrf.mxu0  ;;  %v1504_v27 = vmul.f32 %v2856_v41, %v3670_v3 }
 0x179   :  { %v2860_v4 = vpop.eup %2859  ;;  %2885 = vrcp.f32 %v1325_v34  ;;  %v1323_v31 = vadd.f32 1.0, %v2858_v20  ;;  %v1080_v0 = vmul.f32 %v3535_v17, %v3775_v51  ;;  %v3782_v8 = vadd.f32 %v2364_v25, %v3533_v50 }
 0x17a   :  { %v2862_v32 = vpop.eup %2861  ;;  %2887 = vpow2.f32 %v2190_v6  ;;  %v2193_v36 = vmul.f32 -1.442695, %v1082_v28  ;;  %2418 = vmatprep.mubr.bf16.mxu1 %v1553_v2  ;;  %v957_v60 = vpop.f32.mrf.mxu0  ;;  %v1507_v45 = vmul.f32 %v2860_v4, %v3676_v47 }
 0x17b   :  { %v2864_v7 = vpop.eup %2863  ;;  %2889 = vrcp.f32 %v1323_v31  ;;  %v1326_v35 = vadd.f32 1.0, %v2862_v32  ;;  %v2191_v42 = vmul.f32 -1.442695, %v1080_v0  ;;  %v1085_v30 = vmul.f32 %v3535_v17, %v3782_v8  ;;  %2419 = vmatmul.mubr.bf16.gmra.mxu1 %v1554_v26 }
 0x17c   :  { %v2866_v52 = vpop.eup %2865  ;;  %v1505_v39 = vmul.f32 %v2864_v7, %v3681_v23  ;;  %2891 = vpow2.f32 %v2193_v36  ;;  %v3790_v3 = vadd.f32 %v3533_v50, %v957_v60  ;;  %v2365_v15 = vpop.f32.mrf.mxu0  ;;  %v1556_v59 = vpack.c.bf16 %v1507_v45, %v1506_v43 }
 0x17d   :  { %v2868_v5 = vpop.eup %2867  ;;  %2893 = vrcp.f32 %v1326_v35  ;;  %v1324_v10 = vadd.f32 1.0, %v2866_v52  ;;  %v2196_v53 = vmul.f32 -1.442695, %v1085_v30  ;;  %v3793_v14 = vadd.f32 %v2365_v15, %v3533_v50 }
 0x17e   :  { %v2870_v9 = vpop.eup %2869  ;;  %2895 = vpow2.f32 %v2191_v42  ;;  %v1083_v47 = vmul.f32 %v3535_v17, %v3790_v3  ;;  %v960_v23 = vpop.f32.mrf.mxu0  ;;  %v1555_v55 = vpack.c.bf16 %v1505_v39, %v1504_v27  ;;  %v1510_v45 = vmul.f32 %v2868_v5, %v3684_v19 }
 0x17f   :  { %v2872_v49 = vpop.eup %2871  ;;  %2897 = vrcp.f32 %v1324_v10  ;;  %v1329_v57 = vadd.f32 1.0, %v2870_v9  ;;  %v1086_v61 = vmul.f32 %v3535_v17, %v3793_v14  ;;  %v3801_v58 = vadd.f32 %v3533_v50, %v960_v23 }
 0x180   :  { %v2874_v1 = vpop.eup %2873  ;;  %2899 = vpow2.f32 %v2196_v53  ;;  %v2194_v56 = vmul.f32 -1.442695, %v1083_v47  ;;  %2422 = vmatprep.mubr.bf16.mxu1 %v1555_v55  ;;  %v2368_v63 = vpop.f32.mrf.mxu0  ;;  %v1508_v34 = vmul.f32 %v2872_v49, %v3693_v37 }
 0x181   :  { %v2876_v12 = vpop.eup %2875  ;;  %2901 = vrcp.f32 %v1329_v57  ;;  %v1327_v16 = vadd.f32 1.0, %v2874_v1  ;;  %v2197_v13 = vmul.f32 -1.442695, %v1086_v61  ;;  %v1084_v62 = vmul.f32 %v3535_v17, %v3801_v58 }
 0x182   :  { %v2878_v41 = vpop.eup %2877  ;;  %2903 = vpow2.f32 %v2194_v56  ;;  %v3807_v6 = vadd.f32 %v2368_v63, %v3533_v50  ;;  %v973_v20 = vpop.f32.mrf.mxu0  ;;  %v1511_v31 = vmul.f32 %v2876_v12, %v3700_v11 }
 0x183   :  { %v2880_v28 = vpop.eup %2879  ;;  %2905 = vrcp.f32 %v1327_v16  ;;  %v1330_v2 = vadd.f32 1.0, %v2878_v41  ;;  %v2195_v25 = vmul.f32 -1.442695, %v1084_v62  ;;  %2423 = vmatmul.mubr.bf16.gmra.mxu1 %v1556_v59  ;;  %v3810_v26 = vadd.f32 %v3533_v50, %v973_v20 }
 0x184   :  { %v2882_v4 = vpop.eup %2881  ;;  %v1509_v0 = vmul.f32 %v2880_v28, %v3703_v38  ;;  %2907 = vpow2.f32 %v2197_v13  ;;  %v1089_v37 = vmul.f32 %v3535_v17, %v3807_v6  ;;  %v2369_v32 = vpop.f32.mrf.mxu0  ;;  %v1558_v19 = vpack.c.bf16 %v1511_v31, %v1510_v45 }
 0x185   :  { %v2884_v27 = vpop.eup %2883  ;;  %2909 = vrcp.f32 %v1330_v2  ;;  %v1328_v36 = vadd.f32 1.0, %v2882_v4  ;;  %v1087_v60 = vmul.f32 %v3535_v17, %v3810_v26  ;;  %v3819_v7 = vadd.f32 %v2369_v32, %v3533_v50 }
 0x186   :  { %v2886_v35 = vpop.eup %2885  ;;  %v1333_v42 = vadd.f32 1.0, %v2884_v27  ;;  %2911 = vpow2.f32 %v2195_v25  ;;  %v2200_v11 = vmul.f32 -1.442695, %v1089_v37  ;;  %v976_v30 = vpop.f32.mrf.mxu0  ;;  %v1557_v38 = vpack.c.bf16 %v1509_v0, %v1508_v34 }
 0x187   :  { %v2888_v52 = vpop.eup %2887  ;;  %2913 = vrcp.f32 %v1328_v36  ;;  %v2198_v39 = vmul.f32 -1.442695, %v1087_v60  ;;  %v1090_v15 = vmul.f32 %v3535_v17, %v3819_v7  ;;  %v3825_v9 = vadd.f32 %v3533_v50, %v976_v30 }
 0x188   :  { %v2890_v10 = vpop.eup %2889  ;;  %2915 = vrcp.f32 %v1333_v42  ;;  %v1331_v53 = vadd.f32 1.0, %v2888_v52  ;;  %2426 = vmatprep.mubr.bf16.mxu1 %v1557_v38  ;;  %v2372_v43 = vpop.f32.mrf.mxu0  ;;  %v1514_v37 = vmul.f32 %v2886_v35, %v3710_v44 }
 0x189   :  { %v2892_v47 = vpop.eup %2891  ;;  %2917 = vpow2.f32 %v2200_v11  ;;  %v2201_v23 = vmul.f32 -1.442695, %v1090_v15  ;;  %v3828_v55 = vadd.f32 %v2372_v43, %v3533_v50  ;;  %v1088_v57 = vmul.f32 %v3535_v17, %v3825_v9 }
 0x18a   :  { %v2894_v5 = vpop.eup %2893  ;;  %2919 = vrcp.f32 %v1331_v53  ;;  %v1334_v49 = vadd.f32 1.0, %v2892_v47  ;;  %v989_v61 = vpop.f32.mrf.mxu0  ;;  %v1512_v25 = vmul.f32 %v2890_v10, %v3719_v22  ;;  %v3851_v22 = vld [vmem:[#allocation8 + $0x3] ss:$0 sm:$0xff] }
 0x18b   :  { %v2896_v1 = vpop.eup %2895  ;;  %2921 = vpow2.f32 %v2198_v39  ;;  %v1093_v56 = vmul.f32 %v3535_v17, %v3828_v55  ;;  %2427 = vmatmul.mubr.bf16.gmra.mxu1 %v1558_v19  ;;  %v3835_v63 = vadd.f32 %v3533_v50, %v989_v61  ;;  %v1515_v12 = vmul.f32 %v2894_v5, %v3722_v48 }
 0x18c   :  { %v2898_v59 = vpop.eup %2897  ;;  %2923 = vrcp.f32 %v1334_v49  ;;  %v1332_v16 = vadd.f32 1.0, %v2896_v1  ;;  %v2199_v13 = vmul.f32 -1.442695, %v1088_v57  ;;  %v2373_v62 = vpop.f32.mrf.mxu0 }
 0x18d   :  { %v2900_v41 = vpop.eup %2899  ;;  %v1513_v34 = vmul.f32 %v2898_v59, %v3729_v24  ;;  %2925 = vpow2.f32 %v2201_v23  ;;  %v2204_v20 = vmul.f32 -1.442695, %v1093_v56  ;;  %v1091_v28 = vmul.f32 %v3535_v17, %v3835_v63  ;;  %v3846_v24 = vld [vmem:[#allocation8] ss:$0 sm:$0xff] }
 0x18e   :  { %v2902_v2 = vpop.eup %2901  ;;  %2927 = vrcp.f32 %v1332_v16  ;;  %v1337_v4 = vadd.f32 1.0, %v2900_v41  ;;  %v3843_v31 = vadd.f32 %v2373_v62, %v3533_v50  ;;  %v992_v48 = vpop.f32.mrf.mxu0  ;;  %v1560_v30 = vpack.c.bf16 %v1515_v12, %v1514_v37 }
 0x18f   :  { %v2904_v0 = vpop.eup %2903  ;;  %2929 = vpow2.f32 %v2199_v13  ;;  %v2202_v32 = vmul.f32 -1.442695, %v1091_v28  ;;  %v3849_v27 = vadd.f32 %v3846_v24, %v992_v48  ;;  %v1559_v60 = vpack.c.bf16 %v1513_v34, %v1512_v25 }
 0x190   :  { %v2906_v17 = vpop.eup %2905  ;;  %2931 = vrcp.f32 %v1337_v4  ;;  %v1335_v36 = vadd.f32 1.0, %v2904_v0  ;;  %v1094_v50 = vmul.f32 %v3851_v22, %v3843_v31  ;;  %v2376_v42 = vpop.f32.mrf.mxu0  ;;  %v1518_v59 = vmul.f32 %v2902_v2, %v3734_v33 }
 0x191   :  { %v2908_v11 = vpop.eup %2907  ;;  %2933 = vpow2.f32 %v2204_v20  ;;  %v1092_v44 = vmul.f32 %v3851_v22, %v3849_v27  ;;  %v3858_v35 = vadd.f32 %v3846_v24, %v2376_v42  ;;  %2430 = vmatprep.mubr.bf16.mxu1 %v1559_v60  ;;  %v1516_v12 = vmul.f32 %v2906_v17, %v3737_v29 }
 0x192   :  { %v2910_v38 = vpop.eup %2909  ;;  %2935 = vrcp.f32 %v1335_v36  ;;  %v1338_v52 = vadd.f32 1.0, %v2908_v11  ;;  %v2205_v45 = vmul.f32 -1.442695, %v1094_v50  ;;  %v1005_v39 = vpop.f32.mrf.mxu0 }
 0x193   :  { %v2912_v15 = vpop.eup %2911  ;;  %2937 = vpow2.f32 %v2202_v32  ;;  %v2203_v10 = vmul.f32 -1.442695, %v1092_v44  ;;  %v1097_v53 = vmul.f32 %v3851_v22, %v3858_v35  ;;  %2431 = vmatmul.mubr.bf16.gmra.mxu1 %v1560_v30  ;;  %v1519_v47 = vmul.f32 %v2910_v38, %v3746_v18 }
 0x194   :  { %v2914_v43 = vpop.eup %2913  ;;  %2939 = vrcp.f32 %v1338_v52  ;;  %v1336_v23 = vadd.f32 1.0, %v2912_v15  ;;  %v3864_v19 = vadd.f32 %v3846_v24, %v1005_v39  ;;  %v2377_v5 = vpop.f32.mrf.mxu0 }
 0x195   :  { %v2916_v49 = vpop.eup %2915  ;;  %v1517_v57 = vmul.f32 %v2914_v43, %v3753_v40  ;;  %2941 = vpow2.f32 %v2205_v45  ;;  %v2208_v61 = vmul.f32 -1.442695, %v1097_v53  ;;  %v3868_v1 = vadd.f32 %v3846_v24, %v2377_v5 }
 0x196   :  { %v2918_v56 = vpop.eup %2917  ;;  %2943 = vrcp.f32 %v1336_v23  ;;  %v1095_v18 = vmul.f32 %v3851_v22, %v3864_v19  ;;  %v1008_v16 = vpop.f32.mrf.mxu0  ;;  %v1562_v29 = vpack.c.bf16 %v1519_v47, %v1518_v59  ;;  %v1522_v53 = vmul.f32 %v2916_v49, %v3756_v46 }
 0x197   :  { %v2920_v13 = vpop.eup %2919  ;;  %v1341_v62 = vadd.f32 1.0, %v2918_v56  ;;  %2945 = vpow2.f32 %v2203_v10  ;;  %v1098_v40 = vmul.f32 %v3851_v22, %v3868_v1  ;;  %v3877_v41 = vadd.f32 %v3846_v24, %v1008_v16 }
 0x198   :  { %v2922_v34 = vpop.eup %2921  ;;  %2947 = vpow2.f32 %v2208_v61  ;;  %v2206_v20 = vmul.f32 -1.442695, %v1095_v18  ;;  %v1561_v33 = vpack.c.bf16 %v1517_v57, %v1516_v12  ;;  %v2380_v28 = vpop.f32.mrf.mxu0  ;;  %v1520_v11 = vmul.f32 %v2920_v13, %v3763_v54 }
 0x199   :  { %v2924_v2 = vpop.eup %2923  ;;  %2949 = vrcp.f32 %v1341_v62  ;;  %v1339_v25 = vadd.f32 1.0, %v2922_v34  ;;  %v2209_v4 = vmul.f32 -1.442695, %v1098_v40  ;;  %v1096_v48 = vmul.f32 %v3851_v22, %v3877_v41 }
 0x19a   :  { %v2926_v0 = vpop.eup %2925  ;;  %2951 = vpow2.f32 %v2206_v20  ;;  %2434 = vmatprep.mubr.bf16.mxu1 %v1561_v33  ;;  %v3882_v37 = vadd.f32 %v3846_v24, %v2380_v28  ;;  %v1021_v32 = vpop.f32.mrf.mxu0  ;;  %v1523_v45 = vmul.f32 %v2924_v2, %v3772_v21 }
 0x19b   :  { %v2928_v17 = vpop.eup %2927  ;;  %2953 = vrcp.f32 %v1339_v25  ;;  %v1342_v36 = vadd.f32 1.0, %v2926_v0  ;;  %v2207_v50 = vmul.f32 -1.442695, %v1096_v48  ;;  %2435 = vmatmul.mubr.bf16.gmra.mxu1 %v1562_v29  ;;  %v3885_v60 = vadd.f32 %v3846_v24, %v1021_v32 }
 0x19c   :  { %v2930_v42 = vpop.eup %2929  ;;  %v1521_v44 = vmul.f32 %v2928_v17, %v3775_v51  ;;  %2955 = vpow2.f32 %v2209_v4  ;;  %v1101_v30 = vmul.f32 %v3851_v22, %v3882_v37  ;;  %v2381_v38 = vpop.f32.mrf.mxu0  ;;  %v1564_v46 = vpack.c.bf16 %v1523_v45, %v1522_v53 }
 0x19d   :  { %v2932_v52 = vpop.eup %2931  ;;  %2957 = vrcp.f32 %v1342_v36  ;;  %v1340_v39 = vadd.f32 1.0, %v2930_v42  ;;  %v1099_v15 = vmul.f32 %v3851_v22, %v3885_v60 }
 0x19e   :  { %v2934_v10 = vpop.eup %2933  ;;  %2959 = vpow2.f32 %v2207_v50  ;;  %v2212_v54 = vmul.f32 -1.442695, %v1101_v30  ;;  %v1024_v43 = vpop.f32.mrf.mxu0  ;;  %v1563_v51 = vpack.c.bf16 %v1521_v44, %v1520_v11  ;;  %v1526_v29 = vmul.f32 %v2932_v52, %v3782_v8 }
 0x19f   :  { %v2936_v47 = vpop.eup %2935  ;;  %2961 = vrcp.f32 %v1340_v39  ;;  %v1345_v23 = vadd.f32 1.0, %v2934_v10  ;;  %v2210_v5 = vmul.f32 -1.442695, %v1099_v15  ;;  %v3896_v57 = vadd.f32 %v3846_v24, %v1024_v43 }
 0x1a0   :  { %v2938_v21 = vpop.eup %2937  ;;  %2438 = vmatprep.mubr.bf16.mxu1 %v1563_v51  ;;  %2963 = vpow2.f32 %v2212_v54  ;;  %v1524_v24 = vmul.f32 %v2936_v47, %v3790_v3 }
 0x1a1   :  { %v2940_v61 = vpop.eup %2939  ;;  %v1343_v56 = vadd.f32 1.0, %v2938_v21  ;;  %v1100_v59 = vmul.f32 %v3851_v22, %v3896_v57  ;;  %2965 = vpow2.f32 %v2210_v5 }
 0x1a2   :  { %v2942_v49 = vpop.eup %2941  ;;  %2967 = vrcp.f32 %v1345_v23  ;;  %v1527_v34 = vmul.f32 %v2940_v61, %v3793_v14 }
 0x1a3   :  { %v2944_v12 = vpop.eup %2943  ;;  %v1346_v18 = vadd.f32 1.0, %v2942_v49  ;;  %v2211_v16 = vmul.f32 -1.442695, %v1100_v59  ;;  %2439 = vmatmul.mubr.bf16.gmra.mxu1 %v1564_v46  ;;  %2969 = vrcp.f32 %v1343_v56 }
 0x1a4   :  { %v2946_v13 = vpop.eup %2945  ;;  %v1525_v62 = vmul.f32 %v2944_v12, %v3801_v58  ;;  %v1566_v3 = vpack.c.bf16 %v1527_v34, %v1526_v29 }
 0x1a5   :  { %v2948_v40 = vpop.eup %2947  ;;  %2971 = vrcp.f32 %v1346_v18  ;;  %v1344_v20 = vadd.f32 1.0, %v2946_v13 }
 0x1a6   :  { %v2950_v22 = vpop.eup %2949  ;;  %2973 = vpow2.f32 %v2211_v16  ;;  %v1565_v33 = vpack.c.bf16 %v1525_v62, %v1524_v24  ;;  %v1349_v32 = vadd.f32 1.0, %v2948_v40  ;;  %v2994_v40 = vld [vmem:[#allocation2 + $0x10] sm:$0xff] }
 0x1a7   :  { %v2952_v28 = vpop.eup %2951  ;;  %2975 = vrcp.f32 %v1344_v20  ;;  %v1530_v44 = vmul.f32 %v2950_v22, %v3807_v6 }
 0x1a8   :  { %v2954_v2 = vpop.eup %2953  ;;  %v1347_v25 = vadd.f32 1.0, %v2952_v28  ;;  %2442 = vmatprep.mubr.bf16.mxu1 %v1565_v33  ;;  %v2996_v28 = vld [vmem:[#allocation2 + $0x18] sm:$0xff] }
 0x1a9   :  { %v2956_v4 = vpop.eup %2955  ;;  %v1528_v36 = vmul.f32 %v2954_v2, %v3810_v26 }
 0x1aa   :  { %v2958_v48 = vpop.eup %2957  ;;  %v1350_v58 = vadd.f32 1.0, %v2956_v4  ;;  %2977 = vrcp.f32 %v1347_v25  ;;  %v2997_v4 = vld [vmem:[#allocation2 + $0x8] sm:$0xff] }
 0x1ab   :  { %v2960_v0 = vpop.eup %2959  ;;  %2443 = vmatmul.mubr.bf16.gmra.mxu1 %v1566_v3  ;;  %v1531_v50 = vmul.f32 %v2958_v48, %v3819_v7 }
 0x1ac   :  { %v2962_v14 = vpop.eup %2961  ;;  %v1348_v17 = vadd.f32 1.0, %v2960_v0  ;;  %2979 = vrcp.f32 %v1350_v58  ;;  %v2998_v0 = vld [vmem:[#allocation2 + $0x30] sm:$0xff] }
 0x1ad   :  { %v1529_v8 = vmul.f32 %v2962_v14, %v3825_v9  ;;  %v2964_v42 = vpop.eup %2963  ;;  %v1568_v15 = vpack.c.bf16 %v1531_v50, %v1530_v44 }
 0x1ae   :  { %2981 = vrcp.f32 %v1348_v17  ;;  %v2966_v11 = vpop.eup %2965  ;;  %v1353_v39 = vadd.f32 1.0, %v2964_v42 }
 0x1af   :  { %2983 = vrcp.f32 %v1349_v32  ;;  %v1567_v30 = vpack.c.bf16 %v1529_v8, %v1528_v36  ;;  %v2968_v38 = vpop.eup %2967  ;;  %v1351_v52 = vadd.f32 1.0, %v2966_v11  ;;  %v2999_v36 = vld [vmem:[#allocation2 + $0x20] sm:$0xff]  ;;  %v3000_v11 = vld [vmem:[#allocation2 + $0x38] sm:$0xff] }
 0x1b0   :  { %v2970_v45 = vpop.eup %2969  ;;  %v1534_v43 = vmul.f32 %v2968_v38, %v3828_v55 }
 0x1b1   :  { %2446 = vmatprep.mubr.bf16.mxu1 %v1567_v30  ;;  %2985 = vrcp.f32 %v1351_v52  ;;  %v1532_v53 = vmul.f32 %v2970_v45, %v3835_v63  ;;  %v3001_v52 = vld [vmem:[#allocation2 + $0x28] sm:$0xff] }
 0x1b2   :  { %v2972_v10 = vpop.eup %2971  ;;  %2987 = vrcp.f32 %v1353_v39 }
 0x1b3   :  { %v2974_v26 = vpop.eup %2973  ;;  %2447 = vmatmul.mubr.bf16.gmra.mxu1 %v1568_v15  ;;  %v1535_v54 = vmul.f32 %v2972_v10, %v3843_v31  ;;  %v3002_v10 = vld [vmem:[#allocation2 + $0x50] sm:$0xff] }
 0x1b4   :  { %v2976_v7 = vpop.eup %2975  ;;  %v1352_v9 = vadd.f32 1.0, %v2974_v26 }
 0x1b5   :  { %v1533_v6 = vmul.f32 %v2976_v7, %v3849_v27  ;;  %v1570_v23 = vpack.c.bf16 %v1535_v54, %v1534_v43 }
 0x1b6   :  { %2989 = vrcp.f32 %v1352_v9 }
 0x1b7   :  { %v1569_v51 = vpack.c.bf16 %v1533_v6, %v1532_v53  ;;  %v2978_v47 = vpop.eup %2977  ;;  %v3003_v53 = vld [vmem:[#allocation2 + $0x40] sm:$0xff] }
 0x1b8   :  { %v1536_v56 = vmul.f32 %v2978_v47, %v3864_v19 }
 0x1b9   :  { %2450 = vmatprep.mubr.bf16.mxu1 %v1569_v51  ;;  %v2980_v5 = vpop.eup %2979  ;;  %v3004_v51 = vld [vmem:[#allocation2 + $0x58] sm:$0xff] }
 0x1ba   :  { %v1539_v31 = vmul.f32 %v2980_v5, %v3868_v1  ;;  %v3919_v1 = vld [vmem:[#allocation8 + $0x2] ss:$0 sm:$0xff] }
 0x1bb   :  { %v2982_v21 = vpop.eup %2981  ;;  %2451 = vmatmul.mubr.bf16.gmra.mxu1 %v1570_v23 }
 0x1bc   :  { %v2984_v61 = vpop.eup %2983  ;;  %v1537_v63 = vmul.f32 %v2982_v21, %v3877_v41  ;;  %v3005_v21 = vld [vmem:[#allocation2 + $0x48] sm:$0xff] }
 0x1bd   :  { %v1538_v27 = vmul.f32 %v2984_v61, %v3858_v35 }
 0x1be   :  { %v1571_v59 = vpack.c.bf16 %v1537_v63, %v1536_v56  ;;  %v2986_v46 = vpop.eup %2985 }
 0x1bf   :  { %v1572_v55 = vpack.c.bf16 %v1539_v31, %v1538_v27  ;;  %v2988_v49 = vpop.eup %2987  ;;  %v1540_v18 = vmul.f32 %v2986_v46, %v3885_v60  ;;  %v2995_v60 = vld [vmem:[#allocation2] sm:$0xff]  ;;  %v3006_v31 = vld [vmem:[#allocation2 + $0x70] sm:$0xff] }
 0x1c0   :  { %2454 = vmatprep.mubr.bf16.mxu1 %v1571_v59  ;;  %v1542_v13 = vmul.f32 %v2988_v49, %v3882_v37 }
 0x1c2   :  { %v1574_v41 = vpack.c.bf16 %v1542_v13, %v1542_v13 }
 0x1c3   :  { %v2990_v12 = vpop.eup %2989  ;;  %2455 = vmatmul.mubr.bf16.gmra.mxu1 %v1572_v55  ;;  %v3007_v55 = vld [vmem:[#allocation2 + $0x60] sm:$0xff] }
 0x1c4   :  { %v1541_v16 = vmul.f32 %v2990_v12, %v3896_v57 }
 0x1c6   :  { %v1573_v19 = vpack.c.bf16 %v1541_v16, %v1540_v18  ;;  %v3008_v16 = vld [vmem:[#allocation2 + $0x78] sm:$0xff] }
 0x1c8   :  { %2458 = vmatprep.mubr.bf16.mxu1 %v1573_v19 }
 0x1cb   :  { %2459 = vmatmul.mubr.bf16.gmra.mxu1 %v1574_v41  ;;  %v3009_v41 = vld [vmem:[#allocation2 + $0x68] sm:$0xff] }
 0x210   :  { %v2400_v24 = vpop.f32.mrf.mxu1 }
 0x211   :  { %v1686_v35 = vadd.f32 %v2400_v24, %v3919_v1 }
 0x212   :  { %v1677_v62 = vpop.f32.mrf.mxu1 }
 0x213   :  { %v1933_v34 = vadd.f32 %v2994_v40, %v1686_v35  ;;  %v1678_v20 = vadd.f32 %v3919_v1, %v1677_v62 }
 0x214   :  { %v2401_v22 = vpop.f32.mrf.mxu1 }
 0x215   :  { %1996 = vst [vmem:[#allocation10 + $0x10] sm:$0xff] %v1933_v34  ;;  %v1931_v57 = vadd.f32 %v2995_v60, %v1678_v20  ;;  %v1689_v37 = vadd.f32 %v2401_v22, %v3919_v1  ;;  %v3010_v34 = vld [vmem:[#allocation2 + $0x90] sm:$0xff] }
 0x216   :  { %v1680_v33 = vpop.f32.mrf.mxu1 }
 0x217   :  { %1994 = vst [vmem:[#allocation10] sm:$0xff] %v1931_v57  ;;  %v1934_v29 = vadd.f32 %v2996_v28, %v1689_v37  ;;  %v1681_v2 = vadd.f32 %v3919_v1, %v1680_v33  ;;  %v3011_v57 = vld [vmem:[#allocation2 + $0x80] sm:$0xff] }
 0x219   :  { %v2404_v25 = vpop.f32.mrf.mxu1  ;;  %1997 = vst [vmem:[#allocation10 + $0x18] sm:$0xff] %v1934_v29  ;;  %v1932_v3 = vadd.f32 %v2997_v4, %v1681_v2  ;;  %v3012_v29 = vld [vmem:[#allocation2 + $0x98] sm:$0xff] }
 0x21a   :  { %v1702_v48 = vadd.f32 %v2404_v25, %v3919_v1 }
 0x21b   :  { %v1693_v58 = vpop.f32.mrf.mxu1  ;;  %1995 = vst [vmem:[#allocation10 + $0x8] sm:$0xff] %v1932_v3  ;;  %v3013_v3 = vld [vmem:[#allocation2 + $0x88] sm:$0xff] }
 0x21c   :  { %v1937_v32 = vadd.f32 %v2998_v0, %v1702_v48  ;;  %v1694_v14 = vadd.f32 %v3919_v1, %v1693_v58 }
 0x21d   :  { %v2405_v17 = vpop.f32.mrf.mxu1 }
 0x21e   :  { %2000 = vst [vmem:[#allocation10 + $0x30] sm:$0xff] %v1937_v32  ;;  %v1935_v50 = vadd.f32 %v2999_v36, %v1694_v14  ;;  %v1705_v8 = vadd.f32 %v2405_v17, %v3919_v1  ;;  %v3014_v32 = vld [vmem:[#allocation2 + $0xb0] sm:$0xff] }
 0x21f   :  { %v1696_v42 = vpop.f32.mrf.mxu1 }
 0x220   :  { %1998 = vst [vmem:[#allocation10 + $0x20] sm:$0xff] %v1935_v50  ;;  %v1938_v44 = vadd.f32 %v3000_v11, %v1705_v8  ;;  %v1697_v30 = vadd.f32 %v3919_v1, %v1696_v42  ;;  %v3015_v50 = vld [vmem:[#allocation2 + $0xa0] sm:$0xff] }
 0x221   :  { %v2408_v38 = vpop.f32.mrf.mxu1 }
 0x222   :  { %2001 = vst [vmem:[#allocation10 + $0x38] sm:$0xff] %v1938_v44  ;;  %v1936_v45 = vadd.f32 %v3001_v52, %v1697_v30  ;;  %v1718_v39 = vadd.f32 %v2408_v38, %v3919_v1  ;;  %v3016_v44 = vld [vmem:[#allocation2 + $0xb8] sm:$0xff] }
 0x223   :  { %v1709_v15 = vpop.f32.mrf.mxu1 }
 0x224   :  { %1999 = vst [vmem:[#allocation10 + $0x28] sm:$0xff] %v1936_v45  ;;  %v1941_v26 = vadd.f32 %v3002_v10, %v1718_v39  ;;  %v1710_v7 = vadd.f32 %v3919_v1, %v1709_v15  ;;  %v3017_v45 = vld [vmem:[#allocation2 + $0xa8] sm:$0xff] }
 0x225   :  { %v2409_v9 = vpop.f32.mrf.mxu1 }
 0x226   :  { %2004 = vst [vmem:[#allocation10 + $0x50] sm:$0xff] %v1941_v26  ;;  %v1939_v54 = vadd.f32 %v3003_v53, %v1710_v7  ;;  %v1721_v6 = vadd.f32 %v2409_v9, %v3919_v1  ;;  %v3018_v26 = vld [vmem:[#allocation2 + $0xd0] sm:$0xff] }
 0x227   :  { %v1712_v43 = vpop.f32.mrf.mxu1 }
 0x228   :  { %2002 = vst [vmem:[#allocation10 + $0x40] sm:$0xff] %v1939_v54  ;;  %v1942_v47 = vadd.f32 %v3004_v51, %v1721_v6  ;;  %v1713_v23 = vadd.f32 %v3919_v1, %v1712_v43  ;;  %v3019_v54 = vld [vmem:[#allocation2 + $0xc0] sm:$0xff] }
 0x229   :  { %v2412_v5 = vpop.f32.mrf.mxu1 }
 0x22a   :  { %2005 = vst [vmem:[#allocation10 + $0x58] sm:$0xff] %v1942_v47  ;;  %v1940_v61 = vadd.f32 %v3005_v21, %v1713_v23  ;;  %v1734_v56 = vadd.f32 %v2412_v5, %v3919_v1  ;;  %v3020_v47 = vld [vmem:[#allocation2 + $0xd8] sm:$0xff] }
 0x22b   :  { %v1725_v63 = vpop.f32.mrf.mxu1 }
 0x22c   :  { %2003 = vst [vmem:[#allocation10 + $0x48] sm:$0xff] %v1940_v61  ;;  %v1945_v59 = vadd.f32 %v3006_v31, %v1734_v56  ;;  %v1726_v27 = vadd.f32 %v3919_v1, %v1725_v63  ;;  %v3021_v61 = vld [vmem:[#allocation2 + $0xc8] sm:$0xff] }
 0x22d   :  { %v2413_v46 = vpop.f32.mrf.mxu1 }
 0x22e   :  { %2008 = vst [vmem:[#allocation10 + $0x70] sm:$0xff] %v1945_v59  ;;  %v1943_v49 = vadd.f32 %v3007_v55, %v1726_v27  ;;  %v1737_v12 = vadd.f32 %v2413_v46, %v3919_v1  ;;  %v3022_v59 = vld [vmem:[#allocation2 + $0xf0] sm:$0xff] }
 0x22f   :  { %v1728_v18 = vpop.f32.mrf.mxu1 }
 0x230   :  { %2006 = vst [vmem:[#allocation10 + $0x60] sm:$0xff] %v1943_v49  ;;  %v1946_v13 = vadd.f32 %v3008_v16, %v1737_v12  ;;  %v1729_v19 = vadd.f32 %v3919_v1, %v1728_v18  ;;  %v3023_v49 = vld [vmem:[#allocation2 + $0xe0] sm:$0xff] }
 0x232   :  { %2009 = vst [vmem:[#allocation10 + $0x78] sm:$0xff] %v1946_v13  ;;  %v1944_v24 = vadd.f32 %v3009_v41, %v1729_v19  ;;  %v3024_v13 = vld [vmem:[#allocation2 + $0xf8] sm:$0xff] }
 0x233   :  { %v2416_v35 = vpop.f32.mrf.mxu1 }
 0x234   :  { %2007 = vst [vmem:[#allocation10 + $0x68] sm:$0xff] %v1944_v24  ;;  %v1750_v62 = vadd.f32 %v2416_v35, %v3919_v1  ;;  %v3025_v35 = vld [vmem:[#allocation2 + $0xe8] sm:$0xff] }
 0x235   :  { %v1741_v40 = vpop.f32.mrf.mxu1 }
 0x236   :  { %v1949_v20 = vadd.f32 %v3010_v34, %v1750_v62  ;;  %v1742_v22 = vadd.f32 %v3919_v1, %v1741_v40 }
 0x237   :  { %v2417_v60 = vpop.f32.mrf.mxu1 }
 0x238   :  { %2012 = vst [vmem:[#allocation10 + $0x90] sm:$0xff] %v1949_v20  ;;  %v1947_v37 = vadd.f32 %v3011_v57, %v1742_v22  ;;  %v1753_v33 = vadd.f32 %v2417_v60, %v3919_v1  ;;  %v3026_v20 = vld [vmem:[#allocation2 + $0x110] sm:$0xff] }
 0x239   :  { %v1744_v28 = vpop.f32.mrf.mxu1 }
 0x23a   :  { %2010 = vst [vmem:[#allocation10 + $0x80] sm:$0xff] %v1947_v37  ;;  %v1950_v2 = vadd.f32 %v3012_v29, %v1753_v33  ;;  %v1745_v25 = vadd.f32 %v3919_v1, %v1744_v28  ;;  %v3027_v37 = vld [vmem:[#allocation2 + $0x100] sm:$0xff] }
 0x23b   :  { %v2420_v4 = vpop.f32.mrf.mxu1 }
 0x23c   :  { %2013 = vst [vmem:[#allocation10 + $0x98] sm:$0xff] %v1950_v2  ;;  %v1948_v48 = vadd.f32 %v3013_v3, %v1745_v25  ;;  %v1766_v58 = vadd.f32 %v2420_v4, %v3919_v1  ;;  %v3028_v2 = vld [vmem:[#allocation2 + $0x118] sm:$0xff] }
 0x23d   :  { %v1757_v0 = vpop.f32.mrf.mxu1 }
 0x23e   :  { %2011 = vst [vmem:[#allocation10 + $0x88] sm:$0xff] %v1948_v48  ;;  %v1953_v14 = vadd.f32 %v3014_v32, %v1766_v58  ;;  %v1758_v17 = vadd.f32 %v3919_v1, %v1757_v0  ;;  %v3029_v48 = vld [vmem:[#allocation2 + $0x108] sm:$0xff] }
 0x23f   :  { %v2421_v36 = vpop.f32.mrf.mxu1 }
 0x240   :  { %2016 = vst [vmem:[#allocation10 + $0xb0] sm:$0xff] %v1953_v14  ;;  %v1951_v8 = vadd.f32 %v3015_v50, %v1758_v17  ;;  %v1769_v42 = vadd.f32 %v2421_v36, %v3919_v1  ;;  %v3030_v14 = vld [vmem:[#allocation2 + $0x130] sm:$0xff] }
 0x241   :  { %v1760_v11 = vpop.f32.mrf.mxu1 }
 0x242   :  { %2014 = vst [vmem:[#allocation10 + $0xa0] sm:$0xff] %v1951_v8  ;;  %v1954_v30 = vadd.f32 %v3016_v44, %v1769_v42  ;;  %v1761_v38 = vadd.f32 %v3919_v1, %v1760_v11  ;;  %v3031_v8 = vld [vmem:[#allocation2 + $0x120] sm:$0xff] }
 0x243   :  { %v2424_v52 = vpop.f32.mrf.mxu1 }
 0x244   :  { %2017 = vst [vmem:[#allocation10 + $0xb8] sm:$0xff] %v1954_v30  ;;  %v1952_v39 = vadd.f32 %v3017_v45, %v1761_v38  ;;  %v1782_v15 = vadd.f32 %v2424_v52, %v3919_v1  ;;  %v3032_v30 = vld [vmem:[#allocation2 + $0x138] sm:$0xff] }
 0x245   :  { %v1773_v10 = vpop.f32.mrf.mxu1 }
 0x246   :  { %2015 = vst [vmem:[#allocation10 + $0xa8] sm:$0xff] %v1952_v39  ;;  %v1957_v7 = vadd.f32 %v3018_v26, %v1782_v15  ;;  %v1774_v9 = vadd.f32 %v3919_v1, %v1773_v10  ;;  %v3033_v39 = vld [vmem:[#allocation2 + $0x128] sm:$0xff] }
 0x247   :  { %v2425_v53 = vpop.f32.mrf.mxu1 }
 0x248   :  { %2020 = vst [vmem:[#allocation10 + $0xd0] sm:$0xff] %v1957_v7  ;;  %v1955_v6 = vadd.f32 %v3019_v54, %v1774_v9  ;;  %v1785_v43 = vadd.f32 %v2425_v53, %v3919_v1  ;;  %v3034_v7 = vld [vmem:[#allocation2 + $0x150] sm:$0xff] }
 0x249   :  { %v1776_v51 = vpop.f32.mrf.mxu1 }
 0x24a   :  { %2018 = vst [vmem:[#allocation10 + $0xc0] sm:$0xff] %v1955_v6  ;;  %v1958_v23 = vadd.f32 %v3020_v47, %v1785_v43  ;;  %v1777_v5 = vadd.f32 %v3919_v1, %v1776_v51  ;;  %v3035_v6 = vld [vmem:[#allocation2 + $0x140] sm:$0xff] }
 0x24b   :  { %v2428_v21 = vpop.f32.mrf.mxu1 }
 0x24c   :  { %2021 = vst [vmem:[#allocation10 + $0xd8] sm:$0xff] %v1958_v23  ;;  %v1956_v56 = vadd.f32 %v3021_v61, %v1777_v5  ;;  %v1798_v63 = vadd.f32 %v2428_v21, %v3919_v1  ;;  %v3036_v23 = vld [vmem:[#allocation2 + $0x158] sm:$0xff] }
 0x24d   :  { %v1789_v31 = vpop.f32.mrf.mxu1 }
 0x24e   :  { %2019 = vst [vmem:[#allocation10 + $0xc8] sm:$0xff] %v1956_v56  ;;  %v1961_v27 = vadd.f32 %v3022_v59, %v1798_v63  ;;  %v1790_v46 = vadd.f32 %v3919_v1, %v1789_v31  ;;  %v3037_v56 = vld [vmem:[#allocation2 + $0x148] sm:$0xff] }
 0x24f   :  { %v2429_v55 = vpop.f32.mrf.mxu1 }
 0x250   :  { %2024 = vst [vmem:[#allocation10 + $0xf0] sm:$0xff] %v1961_v27  ;;  %v1959_v12 = vadd.f32 %v3023_v49, %v1790_v46  ;;  %v1801_v18 = vadd.f32 %v2429_v55, %v3919_v1  ;;  %v3038_v27 = vld [vmem:[#allocation2 + $0x170] sm:$0xff] }
 0x251   :  { %v1792_v16 = vpop.f32.mrf.mxu1 }
 0x252   :  { %2022 = vst [vmem:[#allocation10 + $0xe0] sm:$0xff] %v1959_v12  ;;  %v1962_v19 = vadd.f32 %v3024_v13, %v1801_v18  ;;  %v1793_v41 = vadd.f32 %v3919_v1, %v1792_v16  ;;  %v3039_v12 = vld [vmem:[#allocation2 + $0x160] sm:$0xff] }
 0x253   :  { %v2432_v24 = vpop.f32.mrf.mxu1 }
 0x254   :  { %2025 = vst [vmem:[#allocation10 + $0xf8] sm:$0xff] %v1962_v19  ;;  %v1960_v62 = vadd.f32 %v3025_v35, %v1793_v41  ;;  %v1814_v40 = vadd.f32 %v2432_v24, %v3919_v1  ;;  %v3040_v19 = vld [vmem:[#allocation2 + $0x178] sm:$0xff] }
 0x255   :  { %v1805_v34 = vpop.f32.mrf.mxu1 }
 0x256   :  { %2023 = vst [vmem:[#allocation10 + $0xe8] sm:$0xff] %v1960_v62  ;;  %v1965_v22 = vadd.f32 %v3026_v20, %v1814_v40  ;;  %v1806_v60 = vadd.f32 %v3919_v1, %v1805_v34  ;;  %v3041_v62 = vld [vmem:[#allocation2 + $0x168] sm:$0xff] }
 0x257   :  { %v2433_v57 = vpop.f32.mrf.mxu1 }
 0x258   :  { %2028 = vst [vmem:[#allocation10 + $0x110] sm:$0xff] %v1965_v22  ;;  %v1963_v33 = vadd.f32 %v3027_v37, %v1806_v60  ;;  %v1817_v28 = vadd.f32 %v2433_v57, %v3919_v1  ;;  %v3042_v22 = vld [vmem:[#allocation2 + $0x190] sm:$0xff] }
 0x259   :  { %v1808_v29 = vpop.f32.mrf.mxu1 }
 0x25a   :  { %2026 = vst [vmem:[#allocation10 + $0x100] sm:$0xff] %v1963_v33  ;;  %v1966_v25 = vadd.f32 %v3028_v2, %v1817_v28  ;;  %v1809_v4 = vadd.f32 %v3919_v1, %v1808_v29  ;;  %v3043_v33 = vld [vmem:[#allocation2 + $0x180] sm:$0xff] }
 0x25b   :  { %v2436_v3 = vpop.f32.mrf.mxu1 }
 0x25c   :  { %2029 = vst [vmem:[#allocation10 + $0x118] sm:$0xff] %v1966_v25  ;;  %v1964_v58 = vadd.f32 %v3029_v48, %v1809_v4  ;;  %v1830_v0 = vadd.f32 %v2436_v3, %v3919_v1  ;;  %v3044_v25 = vld [vmem:[#allocation2 + $0x198] sm:$0xff] }
 0x25d   :  { %v1821_v32 = vpop.f32.mrf.mxu1 }
 0x25e   :  { %2027 = vst [vmem:[#allocation10 + $0x108] sm:$0xff] %v1964_v58  ;;  %v1969_v17 = vadd.f32 %v3030_v14, %v1830_v0  ;;  %v1822_v36 = vadd.f32 %v3919_v1, %v1821_v32  ;;  %v3045_v58 = vld [vmem:[#allocation2 + $0x188] sm:$0xff] }
 0x25f   :  { %v2437_v50 = vpop.f32.mrf.mxu1 }
 0x260   :  { %2032 = vst [vmem:[#allocation10 + $0x130] sm:$0xff] %v1969_v17  ;;  %v1967_v42 = vadd.f32 %v3031_v8, %v1822_v36  ;;  %v1833_v11 = vadd.f32 %v2437_v50, %v3919_v1  ;;  %v3046_v17 = vld [vmem:[#allocation2 + $0x1b0] sm:$0xff] }
 0x261   :  { %v1824_v44 = vpop.f32.mrf.mxu1 }
 0x262   :  { %2030 = vst [vmem:[#allocation10 + $0x120] sm:$0xff] %v1967_v42  ;;  %v1970_v38 = vadd.f32 %v3032_v30, %v1833_v11  ;;  %v1825_v52 = vadd.f32 %v3919_v1, %v1824_v44  ;;  %v3047_v42 = vld [vmem:[#allocation2 + $0x1a0] sm:$0xff] }
 0x263   :  { %v2440_v45 = vpop.f32.mrf.mxu1 }
 0x264   :  { %2033 = vst [vmem:[#allocation10 + $0x138] sm:$0xff] %v1970_v38  ;;  %v1968_v15 = vadd.f32 %v3033_v39, %v1825_v52  ;;  %v1846_v10 = vadd.f32 %v2440_v45, %v3919_v1  ;;  %v3048_v38 = vld [vmem:[#allocation2 + $0x1b8] sm:$0xff] }
 0x265   :  { %v1837_v26 = vpop.f32.mrf.mxu1 }
 0x266   :  { %2031 = vst [vmem:[#allocation10 + $0x128] sm:$0xff] %v1968_v15  ;;  %v1973_v9 = vadd.f32 %v3034_v7, %v1846_v10  ;;  %v1838_v53 = vadd.f32 %v3919_v1, %v1837_v26  ;;  %v3049_v15 = vld [vmem:[#allocation2 + $0x1a8] sm:$0xff] }
 0x267   :  { %v2441_v54 = vpop.f32.mrf.mxu1 }
 0x268   :  { %2036 = vst [vmem:[#allocation10 + $0x150] sm:$0xff] %v1973_v9  ;;  %v1971_v43 = vadd.f32 %v3035_v6, %v1838_v53  ;;  %v1849_v51 = vadd.f32 %v2441_v54, %v3919_v1  ;;  %v3050_v9 = vld [vmem:[#allocation2 + $0x1d0] sm:$0xff] }
 0x269   :  { %v1840_v47 = vpop.f32.mrf.mxu1 }
 0x26a   :  { %2034 = vst [vmem:[#allocation10 + $0x140] sm:$0xff] %v1971_v43  ;;  %v1974_v5 = vadd.f32 %v3036_v23, %v1849_v51  ;;  %v1841_v21 = vadd.f32 %v3919_v1, %v1840_v47  ;;  %v3051_v43 = vld [vmem:[#allocation2 + $0x1c0] sm:$0xff] }
 0x26b   :  { %v2444_v61 = vpop.f32.mrf.mxu1 }
 0x26c   :  { %2037 = vst [vmem:[#allocation10 + $0x158] sm:$0xff] %v1974_v5  ;;  %v1972_v63 = vadd.f32 %v3037_v56, %v1841_v21  ;;  %v1862_v31 = vadd.f32 %v2444_v61, %v3919_v1  ;;  %v3052_v5 = vld [vmem:[#allocation2 + $0x1d8] sm:$0xff] }
 0x26d   :  { %v1853_v59 = vpop.f32.mrf.mxu1 }
 0x26e   :  { %2035 = vst [vmem:[#allocation10 + $0x148] sm:$0xff] %v1972_v63  ;;  %v1977_v46 = vadd.f32 %v3038_v27, %v1862_v31  ;;  %v1854_v55 = vadd.f32 %v3919_v1, %v1853_v59  ;;  %v3053_v63 = vld [vmem:[#allocation2 + $0x1c8] sm:$0xff] }
 0x26f   :  { %v2445_v49 = vpop.f32.mrf.mxu1 }
 0x270   :  { %2040 = vst [vmem:[#allocation10 + $0x170] sm:$0xff] %v1977_v46  ;;  %v1975_v18 = vadd.f32 %v3039_v12, %v1854_v55  ;;  %v1865_v16 = vadd.f32 %v2445_v49, %v3919_v1  ;;  %v3054_v46 = vld [vmem:[#allocation2 + $0x1f0] sm:$0xff] }
 0x271   :  { %v1856_v13 = vpop.f32.mrf.mxu1 }
 0x272   :  { %2038 = vst [vmem:[#allocation10 + $0x160] sm:$0xff] %v1975_v18  ;;  %v1978_v41 = vadd.f32 %v3040_v19, %v1865_v16  ;;  %v1857_v24 = vadd.f32 %v3919_v1, %v1856_v13  ;;  %v3055_v18 = vld [vmem:[#allocation2 + $0x1e0] sm:$0xff] }
 0x273   :  { %v2448_v35 = vpop.f32.mrf.mxu1 }
 0x274   :  { %2041 = vst [vmem:[#allocation10 + $0x178] sm:$0xff] %v1978_v41  ;;  %v1976_v40 = vadd.f32 %v3041_v62, %v1857_v24  ;;  %v1878_v34 = vadd.f32 %v2448_v35, %v3919_v1  ;;  %v3056_v41 = vld [vmem:[#allocation2 + $0x1e8] sm:$0xff] }
 0x275   :  { %v1869_v20 = vpop.f32.mrf.mxu1 }
 0x276   :  { %2039 = vst [vmem:[#allocation10 + $0x168] sm:$0xff] %v1976_v40  ;;  %v1981_v60 = vadd.f32 %v3042_v22, %v1878_v34  ;;  %v1870_v57 = vadd.f32 %v3919_v1, %v1869_v20 }
 0x277   :  { %v2449_v37 = vpop.f32.mrf.mxu1 }
 0x278   :  { %2044 = vst [vmem:[#allocation10 + $0x190] sm:$0xff] %v1981_v60  ;;  %v1979_v28 = vadd.f32 %v3043_v33, %v1870_v57  ;;  %v1881_v29 = vadd.f32 %v2449_v37, %v3919_v1 }
 0x279   :  { %v1872_v2 = vpop.f32.mrf.mxu1 }
 0x27a   :  { %2042 = vst [vmem:[#allocation10 + $0x180] sm:$0xff] %v1979_v28  ;;  %v1982_v4 = vadd.f32 %v3044_v25, %v1881_v29  ;;  %v1873_v3 = vadd.f32 %v3919_v1, %v1872_v2 }
 0x27b   :  { %v2452_v48 = vpop.f32.mrf.mxu1 }
 0x27c   :  { %2045 = vst [vmem:[#allocation10 + $0x198] sm:$0xff] %v1982_v4  ;;  %v1980_v0 = vadd.f32 %v3045_v58, %v1873_v3  ;;  %v1894_v32 = vadd.f32 %v2452_v48, %v3919_v1 }
 0x27d   :  { %v1885_v14 = vpop.f32.mrf.mxu1 }
 0x27e   :  { %2043 = vst [vmem:[#allocation10 + $0x188] sm:$0xff] %v1980_v0  ;;  %v1985_v36 = vadd.f32 %v3046_v17, %v1894_v32  ;;  %v1886_v50 = vadd.f32 %v3919_v1, %v1885_v14 }
 0x27f   :  { %v2453_v8 = vpop.f32.mrf.mxu1 }
 0x280   :  { %2048 = vst [vmem:[#allocation10 + $0x1b0] sm:$0xff] %v1985_v36  ;;  %v1983_v11 = vadd.f32 %v3047_v42, %v1886_v50  ;;  %v1897_v44 = vadd.f32 %v2453_v8, %v3919_v1 }
 0x281   :  { %v1888_v30 = vpop.f32.mrf.mxu1 }
 0x282   :  { %2046 = vst [vmem:[#allocation10 + $0x1a0] sm:$0xff] %v1983_v11  ;;  %v1986_v52 = vadd.f32 %v3048_v38, %v1897_v44  ;;  %v1889_v45 = vadd.f32 %v3919_v1, %v1888_v30 }
 0x283   :  { %v2456_v39 = vpop.f32.mrf.mxu1 }
 0x284   :  { %2049 = vst [vmem:[#allocation10 + $0x1b8] sm:$0xff] %v1986_v52  ;;  %v1984_v10 = vadd.f32 %v3049_v15, %v1889_v45  ;;  %v1910_v26 = vadd.f32 %v2456_v39, %v3919_v1 }
 0x285   :  { %v1901_v7 = vpop.f32.mrf.mxu1 }
 0x286   :  { %2047 = vst [vmem:[#allocation10 + $0x1a8] sm:$0xff] %v1984_v10  ;;  %v1989_v53 = vadd.f32 %v3050_v9, %v1910_v26  ;;  %v1902_v54 = vadd.f32 %v3919_v1, %v1901_v7 }
 0x287   :  { %v2457_v6 = vpop.f32.mrf.mxu1 }
 0x288   :  { %2052 = vst [vmem:[#allocation10 + $0x1d0] sm:$0xff] %v1989_v53  ;;  %v1987_v51 = vadd.f32 %v3051_v43, %v1902_v54  ;;  %v1913_v47 = vadd.f32 %v2457_v6, %v3919_v1 }
 0x289   :  { %v1904_v23 = vpop.f32.mrf.mxu1 }
 0x28a   :  { %2050 = vst [vmem:[#allocation10 + $0x1c0] sm:$0xff] %v1987_v51  ;;  %v1990_v21 = vadd.f32 %v3052_v5, %v1913_v47  ;;  %v1905_v61 = vadd.f32 %v3919_v1, %v1904_v23 }
 0x28b   :  { %v2460_v56 = vpop.f32.mrf.mxu1 }
 0x28c   :  { %2053 = vst [vmem:[#allocation10 + $0x1d8] sm:$0xff] %v1990_v21  ;;  %v1988_v31 = vadd.f32 %v3053_v63, %v1905_v61  ;;  %v1926_v59 = vadd.f32 %v2460_v56, %v3919_v1 }
 0x28d   :  { %v1917_v27 = vpop.f32.mrf.mxu1 }
 0x28e   :  { %2051 = vst [vmem:[#allocation10 + $0x1c8] sm:$0xff] %v1988_v31  ;;  %v1993_v55 = vadd.f32 %v3054_v46, %v1926_v59  ;;  %v1918_v49 = vadd.f32 %v3919_v1, %v1917_v27 }
 0x28f   :  { %v2461_v12 = vpop.f32.mrf.mxu1 }
 0x290   :  { %2056 = vst [vmem:[#allocation10 + $0x1f0] sm:$0xff] %v1993_v55  ;;  %v1991_v16 = vadd.f32 %v3055_v18, %v1918_v49 }
 0x291   :  { %v1920_v13 = vpop.f32.mrf.mxu1 }
 0x292   :  { %2054 = vst [vmem:[#allocation10 + $0x1e0] sm:$0xff] %v1991_v16  ;;  %v1921_v19 = vadd.f32 %v3919_v1, %v1920_v13 }
 0x294   :  { %v1992_v24 = vadd.f32 %v3056_v41, %v1921_v19 }
 0x296   :  { %2055 = vst [vmem:[#allocation10 + $0x1e8] sm:$0xff] %v1992_v24 }
 0x297   :  { %3148 = shalt.err (!%p3145_p10)
}
 0x298   :  { %2068 = dma.vmem_to_hbm [thread:$0]  %s2063_s3, 8064, %s3994_s4, [#allocation4], %s3169_s25, %s3169_s25, %s3170_s26  }
 0x299   :  { %3163 = dma.done.wait [#allocation4], 8064  }
 0x29a   :  { %3164 = vsyncadd [#allocation4], 4294959232 }
 0x29b   :  { %2072 = vsyncpa [#allocation3], 1 }
 0x29c   :  { %2073 = vsyncpa [#allocation6], 1 }
 0x29d   :  { %2074 = vsyncpa [#allocation9], 1 }
 0x29e   :  { %2075 = vsyncpa [#allocation4], 1 }

</bundles_post_ra>
